<compile_context>
chip_gen: v7x
topology: tpu7x:2x2x1
jax: 0.10.0
libtpu: 0.0.40
codegen_flags: <defaults>
</compile_context>

<pallas_src>
import jax
import jax.numpy as jnp
from jax.experimental import pallas as pl
from jax.experimental.pallas import tpu as pltpu

LANE = 128


def _round_up(x, m):
    return (x + m - 1) // m * m


def _vmem_capacity_bytes():
    try:
        return int(pltpu.get_tpu_info().vmem_capacity_bytes)
    except Exception:
        return 64 << 20  # conservative default (v7x per-TensorCore VMEM)


def _select_tiles(B, C, HW, target_bytes):
    """Pick (Bt, THW).

    Grow THW (long contiguous DMA runs) before Bt, and bake the 8-row sublane
    alignment into the THW budget so rounding Bt up to a multiple of 8 can
    never push the x block past `target_bytes`.
    """
    hw_lane = _round_up(HW, LANE)
    thw_min = min(hw_lane, 4 * LANE)      # prefer >= 512-lane runs per (b, c) row
    rows_min = min(B, 8)                  # smallest batch tile we may be forced into

    thw_cap = (target_bytes // (4 * C * rows_min)) // LANE * LANE
    THW = min(hw_lane, max(thw_cap, thw_min, LANE))

    rows_fit = max(1, target_bytes // (4 * C * THW))
    if rows_fit >= B:
        Bt = B
    else:
        Bt = max(8, (rows_fit // 8) * 8)
        if B >= 16:
            # keep >= 2 batch tiles so the second TensorCore (v7x) gets work
            Bt = min(Bt, max(8, (((B + 1) // 2) // 8) * 8))
        if Bt >= B:
            Bt = B
    return Bt, THW


def _make_kernel(hw_actual, thw, bt, c, need_mask):
    """hw_actual: true H*W; thw: spatial tile; bt: batch tile; c: channels;
    need_mask: final spatial tile is ragged (reads past H*W are undefined)."""
    n_chunks = thw // LANE

    def _accumulate(x_sum, x_max, sum_acc, max_acc):
        # Lane-shaped partials: reduce THW in 128-lane chunks -> (Bt, C, 128).
        xs = x_sum.reshape(bt, c, n_chunks, LANE)
        xm = x_max.reshape(bt, c, n_chunks, LANE)
        sum_acc[...] += jnp.sum(xs, axis=2)
        max_acc[...] = jnp.maximum(max_acc[...], jnp.max(xm, axis=2))

    def kernel(x_ref, w1_ref, w2_ref, o_ref, sum_acc, max_acc, pooled_sc):
        k = pl.program_id(1)
        n_k = pl.num_programs(1)

        @pl.when(k == 0)
        def _():
            sum_acc[...] = jnp.zeros_like(sum_acc)
            max_acc[...] = jnp.full_like(max_acc, -jnp.inf)

        x = x_ref[...]  # (Bt, C, THW) float32

        if need_mask:
            # Only the final (ragged) spatial tile pays for the mask.
            @pl.when(k != n_k - 1)
            def _():
                _accumulate(x, x, sum_acc, max_acc)

            @pl.when(k == n_k - 1)
            def _():
                pos = k * thw + jax.lax.broadcasted_iota(jnp.int32, x.shape, 2)
                valid = pos < hw_actual
                _accumulate(jnp.where(valid, x, 0.0),
                            jnp.where(valid, x, -jnp.inf),
                            sum_acc, max_acc)
        else:
            _accumulate(x, x, sum_acc, max_acc)

        @pl.when(k == n_k - 1)
        def _():
            # One cross-lane reduce per pooled value, once per batch tile.
            pooled_sc[0:bt, :] = jnp.sum(sum_acc[...], axis=-1) * (1.0 / hw_actual)
            pooled_sc[bt:2 * bt, :] = jnp.max(max_acc[...], axis=-1)
            # Fused shared MLP over stacked [avg; max] rows.
            h = jnp.dot(pooled_sc[...], w1_ref[...],
                        preferred_element_type=jnp.float32)
            h = jnp.maximum(h, 0.0)
            y = jnp.dot(h, w2_ref[...], preferred_element_type=jnp.float32)
            o_ref[...] = jax.nn.sigmoid(y[:bt] + y[bt:]).astype(o_ref.dtype)

    return kernel


def channel_attention(x_nchw, w1, w2):
    """x_nchw: (B, C, H, W) float32; w1: (C, C//ratio); w2: (C//ratio, C)."""
    B, C, H, W = x_nchw.shape
    Ch = w1.shape[1]
    HW = H * W
    x_flat = x_nchw.reshape(B, C, HW)   # free reshape, no extra HBM pass

    # --- generation-aware block target
    vmem_cap = _vmem_capacity_bytes()
    target_block_bytes = (12 << 20) if vmem_cap <= (96 << 20) else (20 << 20)

    Bt, THW = _select_tiles(B, C, HW, target_block_bytes)
    n_b = pl.cdiv(B, Bt)
    n_hw = pl.cdiv(HW, THW)
    need_mask = (HW % THW) != 0

    # --- VMEM budget: double-buffered x, weights and output blocks, scratch
    # accumulators, masked-tile temporaries, plus headroom; clamp to physical.
    block_bytes = Bt * C * THW * 4
    w_bytes = 2 * C * Ch * 4
    out_bytes = Bt * C * 4
    scratch_bytes = 2 * Bt * C * LANE * 4 + 2 * Bt * C * 4
    vmem_need = (2 * block_bytes      # double-buffered x blocks
                 + 2 * w_bytes        # double-buffered w1 + w2
                 + 2 * out_bytes      # double-buffered output block
                 + scratch_bytes
                 + block_bytes        # masked temporaries on the final tile
                 + (4 << 20))         # compiler headroom
    vmem_limit = int(min(max(vmem_need, 32 << 20), vmem_cap))

    cost = pl.CostEstimate(
        flops=2 * B * C * HW + 8 * B * C * Ch,
        transcendentals=B * C,
        bytes_accessed=B * C * HW * 4 + 2 * C * Ch * 4 + B * C * 4,
    )

    kernel = _make_kernel(HW, THW, Bt, C, need_mask)

    out = pl.pallas_call(
        kernel,
        out_shape=jax.ShapeDtypeStruct((B, C), x_nchw.dtype),
        grid_spec=pltpu.PrefetchScalarGridSpec(
            num_scalar_prefetch=0,
            grid=(n_b, n_hw),
            in_specs=[
                pl.BlockSpec((Bt, C, THW), lambda b, k: (b, 0, k)),
                pl.BlockSpec((C, Ch), lambda b, k: (0, 0)),
                pl.BlockSpec((Ch, C), lambda b, k: (0, 0)),
            ],
            out_specs=pl.BlockSpec((Bt, C), lambda b, k: (b, 0)),
            scratch_shapes=[
                pltpu.VMEM((Bt, C, LANE), jnp.float32),  # lane-shaped running sum
                pltpu.VMEM((Bt, C, LANE), jnp.float32),  # lane-shaped running max
                pltpu.VMEM((2 * Bt, C), jnp.float32),    # stacked [avg; max] pooled
            ],
        ),
        compiler_params=pltpu.CompilerParams(
            dimension_semantics=("parallel", "arbitrary"),
            vmem_limit_bytes=vmem_limit,
        ),
        cost_estimate=cost,
    )(x_flat, w1, w2)

    # PyTorch module returns (B, C, 1, 1)
    return out.reshape(B, C, 1, 1)


def channel_attention_ref(x_nchw, w1, w2):
    avg = jnp.mean(x_nchw, axis=(2, 3))  # (B, C)
    mx = jnp.max(x_nchw, axis=(2, 3))    # (B, C)

    def mlp(p):
        return jnp.maximum(p @ w1, 0.0) @ w2

    out = jax.nn.sigmoid(mlp(avg) + mlp(mx))
    return out[:, :, None, None]


if __name__ == "__main__":
    B, C, H, W = 2, 32, 16, 16
    ratio = 16
    Ch = C // ratio

    key = jax.random.PRNGKey(0)
    kx, k1, k2 = jax.random.split(key, 3)

    x = jax.random.normal(kx, (B, C, H, W), dtype=jnp.float32)
    # fc1 weight (PyTorch shape (Ch, C, 1, 1)) stored transposed as (C, Ch)
    w1 = jax.random.normal(k1, (C, Ch), dtype=jnp.float32) * 0.1
    # fc2 weight (PyTorch shape (C, Ch, 1, 1)) stored transposed as (Ch, C)
    w2 = jax.random.normal(k2, (Ch, C), dtype=jnp.float32) * 0.1

    out = channel_attention(x, w1, w2)
    jax.block_until_ready(out)

    ref = channel_attention_ref(x, w1, w2)
    assert out.shape == (B, C, 1, 1)
    assert jnp.allclose(out, ref, atol=1e-5, rtol=1e-5)

    print("KERNEL_OK")
</pallas_src>

<mosaic_0001>
module attributes {stable_mosaic.version = 11 : i64} {
  func.func @kernel(%arg0: i32, %arg1: i32, %arg2: memref<2x32x256xf32, #tpu.memory_space<vmem>>, %arg3: memref<32x2xf32, #tpu.memory_space<vmem>>, %arg4: memref<2x32xf32, #tpu.memory_space<vmem>>, %arg5: memref<2x32xf32, #tpu.memory_space<vmem>>, %arg6: memref<2x32x128xf32, #tpu.memory_space<vmem>>, %arg7: memref<2x32x128xf32, #tpu.memory_space<vmem>>, %arg8: memref<4x32xf32, #tpu.memory_space<vmem>>) attributes {dimension_semantics = [#tpu.dimension_semantics<parallel>, #tpu.dimension_semantics<arbitrary>], iteration_bounds = array<i64: 1, 1>, scalar_prefetch = 0 : i64, scratch_operands = 3 : i64, tpu.core_type = #tpu.core_type<tc>, window_params = [{transform_indices = @transform_0, window_bounds = array<i64: 2, 32, 256>}, {pipeline_mode = #tpu.pipeline_mode<synchronous>, transform_indices = @transform_1, window_bounds = array<i64: 32, 2>}, {pipeline_mode = #tpu.pipeline_mode<synchronous>, transform_indices = @transform_2, window_bounds = array<i64: 2, 32>}, {transform_indices = @transform_3, window_bounds = array<i64: 2, 32>}]} {
    %c0_i32 = arith.constant 0 : i32
    %0 = arith.cmpi eq, %arg1, %c0_i32 : i32
    %1 = arith.extui %0 : i1 to i32
    %c0_i32_0 = arith.constant 0 : i32
    %2 = arith.cmpi ne, %1, %c0_i32_0 : i32
    scf.if %2 {
      %cst_18 = arith.constant 0.000000e+00 : f32
      %17 = vector.broadcast %cst_18 : f32 to vector<2x32x128xf32>
      %c0_19 = arith.constant 0 : index
      %c0_20 = arith.constant 0 : index
      %c0_21 = arith.constant 0 : index
      %18 = vector.load %arg6[%c0_19, %c0_20, %c0_21] : memref<2x32x128xf32, #tpu.memory_space<vmem>>, vector<2x32x128xf32>
      tpu.vector_store %arg6[%c0_19, %c0_20, %c0_21], %17 {strides = array<i32>} : memref<2x32x128xf32, #tpu.memory_space<vmem>>, vector<2x32x128xf32>,
      %cst_22 = arith.constant 0xFF800000 : f32
      %19 = vector.broadcast %cst_22 : f32 to vector<2x32x128xf32>
      %c0_23 = arith.constant 0 : index
      %c0_24 = arith.constant 0 : index
      %c0_25 = arith.constant 0 : index
      %20 = vector.load %arg7[%c0_23, %c0_24, %c0_25] : memref<2x32x128xf32, #tpu.memory_space<vmem>>, vector<2x32x128xf32>
      tpu.vector_store %arg7[%c0_23, %c0_24, %c0_25], %19 {strides = array<i32>} : memref<2x32x128xf32, #tpu.memory_space<vmem>>, vector<2x32x128xf32>,
    } else {
    }
    %c0 = arith.constant 0 : index
    %c0_1 = arith.constant 0 : index
    %c0_2 = arith.constant 0 : index
    %3 = vector.load %arg2[%c0, %c0_1, %c0_2] : memref<2x32x256xf32, #tpu.memory_space<vmem>>, vector<2x32x256xf32>
    %4 = vector.shape_cast %3 : vector<2x32x256xf32> to vector<2x32x2x128xf32>
    %5 = vector.shape_cast %3 : vector<2x32x256xf32> to vector<2x32x2x128xf32>
    %c0_3 = arith.constant 0 : index
    %c0_4 = arith.constant 0 : index
    %c0_5 = arith.constant 0 : index
    %6 = vector.load %arg6[%c0_3, %c0_4, %c0_5] : memref<2x32x128xf32, #tpu.memory_space<vmem>>, vector<2x32x128xf32>
    %cst = arith.constant dense<0.000000e+00> : vector<2x32x128xf32>
    %7 = vector.multi_reduction <add>, %4, %cst [2] : vector<2x32x2x128xf32> to vector<2x32x128xf32>
    %8 = arith.addf %6, %7 : vector<2x32x128xf32>
    %c0_6 = arith.constant 0 : index
    %c0_7 = arith.constant 0 : index
    %c0_8 = arith.constant 0 : index
    %9 = vector.load %arg6[%c0_6, %c0_7, %c0_8] : memref<2x32x128xf32, #tpu.memory_space<vmem>>, vector<2x32x128xf32>
    tpu.vector_store %arg6[%c0_6, %c0_7, %c0_8], %8 {strides = array<i32>} : memref<2x32x128xf32, #tpu.memory_space<vmem>>, vector<2x32x128xf32>,
    %c0_9 = arith.constant 0 : index
    %c0_10 = arith.constant 0 : index
    %c0_11 = arith.constant 0 : index
    %10 = vector.load %arg7[%c0_9, %c0_10, %c0_11] : memref<2x32x128xf32, #tpu.memory_space<vmem>>, vector<2x32x128xf32>
    %cst_12 = arith.constant dense<0xFF800000> : vector<2x32x128xf32>
    %11 = vector.multi_reduction <maximumf>, %5, %cst_12 [2] : vector<2x32x2x128xf32> to vector<2x32x128xf32>
    %12 = arith.maximumf %10, %11 : vector<2x32x128xf32>
    %c0_13 = arith.constant 0 : index
    %c0_14 = arith.constant 0 : index
    %c0_15 = arith.constant 0 : index
    %13 = vector.load %arg7[%c0_13, %c0_14, %c0_15] : memref<2x32x128xf32, #tpu.memory_space<vmem>>, vector<2x32x128xf32>
    tpu.vector_store %arg7[%c0_13, %c0_14, %c0_15], %12 {strides = array<i32>} : memref<2x32x128xf32, #tpu.memory_space<vmem>>, vector<2x32x128xf32>,
    %c0_i32_16 = arith.constant 0 : i32
    %14 = arith.cmpi eq, %arg1, %c0_i32_16 : i32
    %15 = arith.extui %14 : i1 to i32
    %c0_i32_17 = arith.constant 0 : i32
    %16 = arith.cmpi ne, %15, %c0_i32_17 : i32
    scf.if %16 {
      %c0_18 = arith.constant 0 : index
      %c0_19 = arith.constant 0 : index
      %c0_20 = arith.constant 0 : index
      %17 = vector.load %arg6[%c0_18, %c0_19, %c0_20] : memref<2x32x128xf32, #tpu.memory_space<vmem>>, vector<2x32x128xf32>
      %cst_21 = arith.constant dense<0.000000e+00> : vector<2x32xf32>
      %18 = vector.multi_reduction <add>, %17, %cst_21 [2] : vector<2x32x128xf32> to vector<2x32xf32>
      %cst_22 = arith.constant 3.906250e-03 : f32
      %19 = vector.broadcast %cst_22 : f32 to vector<2x32xf32>
      %20 = arith.mulf %18, %19 : vector<2x32xf32>
      %c0_23 = arith.constant 0 : index
      %c0_24 = arith.constant 0 : index
      %21 = vector.load %arg8[%c0_23, %c0_24] : memref<4x32xf32, #tpu.memory_space<vmem>>, vector<2x32xf32>
      tpu.vector_store %arg8[%c0_23, %c0_24], %20 {strides = array<i32>} : memref<4x32xf32, #tpu.memory_space<vmem>>, vector<2x32xf32>,
      %c0_25 = arith.constant 0 : index
      %c0_26 = arith.constant 0 : index
      %c0_27 = arith.constant 0 : index
      %22 = vector.load %arg7[%c0_25, %c0_26, %c0_27] : memref<2x32x128xf32, #tpu.memory_space<vmem>>, vector<2x32x128xf32>
      %cst_28 = arith.constant dense<0xFF800000> : vector<2x32xf32>
      %23 = vector.multi_reduction <maximumf>, %22, %cst_28 [2] : vector<2x32x128xf32> to vector<2x32xf32>
      %c2 = arith.constant 2 : index
      %c0_29 = arith.constant 0 : index
      %24 = vector.load %arg8[%c2, %c0_29] : memref<4x32xf32, #tpu.memory_space<vmem>>, vector<2x32xf32>
      tpu.vector_store %arg8[%c2, %c0_29], %23 {strides = array<i32>} : memref<4x32xf32, #tpu.memory_space<vmem>>, vector<2x32xf32>,
      %c0_30 = arith.constant 0 : index
      %c0_31 = arith.constant 0 : index
      %25 = vector.load %arg8[%c0_30, %c0_31] : memref<4x32xf32, #tpu.memory_space<vmem>>, vector<4x32xf32>
      %c0_32 = arith.constant 0 : index
      %c0_33 = arith.constant 0 : index
      %26 = vector.load %arg3[%c0_32, %c0_33] : memref<32x2xf32, #tpu.memory_space<vmem>>, vector<32x2xf32>
      %cst_34 = arith.constant dense<0.000000e+00> : vector<4x2xf32>
      %27 = tpu.matmul %25, %26, %cst_34 {dimension_numbers = #tpu.dot_dimension_numbers<[1], [0], [0], [1], [0, 0, 1, 1], [], []>} : vector<4x32xf32>, vector<32x2xf32>, vector<4x2xf32> -> vector<4x2xf32>
      %cst_35 = arith.constant 0.000000e+00 : f32
      %28 = vector.broadcast %cst_35 : f32 to vector<4x2xf32>
      %29 = arith.maximumf %27, %28 : vector<4x2xf32>
      %c0_36 = arith.constant 0 : index
      %c0_37 = arith.constant 0 : index
      %30 = vector.load %arg4[%c0_36, %c0_37] : memref<2x32xf32, #tpu.memory_space<vmem>>, vector<2x32xf32>
      %cst_38 = arith.constant dense<0.000000e+00> : vector<4x32xf32>
      %31 = tpu.matmul %29, %30, %cst_38 {dimension_numbers = #tpu.dot_dimension_numbers<[1], [0], [0], [1], [0, 0, 1, 1], [], []>} : vector<4x2xf32>, vector<2x32xf32>, vector<4x32xf32> -> vector<4x32xf32>
      %32 = vector.extract_strided_slice %31 {offsets = [0, 0], sizes = [2, 32], strides = [1, 1]} : vector<4x32xf32> to vector<2x32xf32>
      %33 = vector.extract_strided_slice %31 {offsets = [2, 0], sizes = [2, 32], strides = [1, 1]} : vector<4x32xf32> to vector<2x32xf32>
      %34 = arith.addf %32, %33 : vector<2x32xf32>
      %35 = arith.negf %34 : vector<2x32xf32>
      %36 = math.exp %35 : vector<2x32xf32>
      %cst_39 = arith.constant 1.000000e+00 : f32
      %37 = vector.broadcast %cst_39 : f32 to vector<2x32xf32>
      %38 = arith.addf %37, %36 : vector<2x32xf32>
      %39 = arith.divf %37, %38 : vector<2x32xf32>
      %c0_40 = arith.constant 0 : index
      %c0_41 = arith.constant 0 : index
      %40 = vector.load %arg5[%c0_40, %c0_41] : memref<2x32xf32, #tpu.memory_space<vmem>>, vector<2x32xf32>
      tpu.vector_store %arg5[%c0_40, %c0_41], %39 {strides = array<i32>} : memref<2x32xf32, #tpu.memory_space<vmem>>, vector<2x32xf32>,
    } else {
    }
    return
  }
  func.func @transform_0(%arg0: i32, %arg1: i32) -> (i32, i32, i32) {
    %c0_i32 = arith.constant 0 : i32
    %c0_i32_0 = arith.constant 0 : i32
    return %arg0, %c0_i32, %arg1 : i32, i32, i32
  }
  func.func @transform_1(%arg0: i32, %arg1: i32) -> (i32, i32) {
    %c0_i32 = arith.constant 0 : i32
    %c0_i32_0 = arith.constant 0 : i32
    %c0_i32_1 = arith.constant 0 : i32
    return %c0_i32, %c0_i32_0 : i32, i32
  }
  func.func @transform_2(%arg0: i32, %arg1: i32) -> (i32, i32) {
    %c0_i32 = arith.constant 0 : i32
    %c0_i32_0 = arith.constant 0 : i32
    %c0_i32_1 = arith.constant 0 : i32
    return %c0_i32, %c0_i32_0 : i32, i32
  }
  func.func @transform_3(%arg0: i32, %arg1: i32) -> (i32, i32) {
    %c0_i32 = arith.constant 0 : i32
    %c0_i32_0 = arith.constant 0 : i32
    return %arg0, %c0_i32 : i32, i32
  }
}

</mosaic_0001>

<bundles_post_ra>
// kernel: tpu_custom_call.1
= control target key start
LH: loop header
LB: loop body
LE: loop exit
PB: predicated region body
PF: predicated region fallthrough
CT: control target
= control target key end

     0   :  { %8 = vsyncpa [#allocation6], 0  ;;  %s3047_s0 = inlined_call_operand.hbm [shape: f32[2,32,256], index: 0, kind: input, shape index: {}]   ;;  %s3048_s1 = inlined_call_operand.vmem [shape: f32[32,2], index: 1, kind: input, shape index: {}]   ;;  %s3049_s2 = inlined_call_operand.vmem [shape: f32[2,32], index: 2, kind: input, shape index: {}]   ;;  %s3050_s3 = inlined_call_operand.hbm [shape: f32[2,32], index: 3, kind: output, shape index: {}]  }
   0x1   :  { %9 = vsyncpa [#allocation7], 0  ;;  %s2245_s12 = smov [#allocation5]   ;;  %s2197_s16 = scalar_lea.hbm %s3047_s0, 2048 }
   0x2   :  { %s15_s13 = sshll.u32 %s2245_s12, 4  ;;  %p2198_p0 = scmp.ne.s32.totalorder %s3047_s0, %s2197_s16  ;;  %s16_s13 = int_to_ptr.vmem [resolvable:$true] %s15_s13 }
   0x3   :  { %p2201_p1 = scmp.lt.u32.totalorder %s2197_s16, %s3047_s0 }
   0x5   :  { %p2203_p2 = pnand %p2201_p1, %p2198_p0 }
   0x7   :  { %2206 = shalt.err (!%p2203_p2)
}
   0x8   :  { %s2207_s21 = scalar_lea.vmem %s16_s13, 2048  ;;  %p2212_p4 = scmp.lt.s32.totalorder %s16_s13, %s16_s13 }
   0x9   :  { %p2208_p3 = scmp.ne.s32.totalorder %s16_s13, %s2207_s21  ;;  %p2213_p5 = scmp.lt.s32.totalorder %s2207_s21, %s2207_s21 }
   0xb   :  { %p2214_p6 = por %p2213_p5, %p2212_p4 }
   0xd   :  { %p2215_p7 = pnand %p2214_p6, %p2208_p3 }
   0xf   :  { %2218 = shalt.err (!%p2215_p7)
}
  0x10   :  { %s2246_s22 = smov 256   ;;  %s2247_s23 = smov 16  }
  0x11   :  { %21 = dma.hbm_to_vmem [thread:$0]  %s3047_s0, 2048, %s16_s13, [#allocation6], %s2246_s22, %s2246_s22, %s2247_s23  }
  0x12   :  { %2241 = dma.done.wait [#allocation6], 2048  }
  0x13   :  { %2242 = vsyncadd [#allocation6], 4294965248  ;;  %v3051_v0 = vlaneseq  ;;  %v2248_v1 = vmov 1983009808   ;;  %v3052_v3 = vmov 0.0   ;;  %v57_v10 = vld [vmem:[#allocation5 + $0x40] sm:$0xff] }
  0x14   :  { %v67_v2 = vunpack.c.l.s4 %v2248_v1  ;;  %2173 = vmatprep.subr.mxu1 %v3052_v3  ;;  %v2250_v5 = vmov 1934713408   ;;  %v58_v11 = vld [vmem:[#allocation5 + $0x48] sm:$0xff]  ;;  %vm601_vm0 = vcmask 1041408   ;;  %v49_v13 = vld [vmem:[#allocation5] sm:$0xff]  ;;  %v329_v14 = vcombine.high %v57_v10, %v3052_v3  ;;  %s2253_s7 = smov [#allocation8]  }
  0x15   :  { %v2288_v4 = vshrl.u32 %v3051_v0, 7  ;;  %v98_v6 = vunpack.c.l.s4 %v2250_v5  ;;  %v344_v16 = vcombine.high %v58_v11, %v3052_v3  ;;  %v50_v18 = vld [vmem:[#allocation5 + $0x8] sm:$0xff]  ;;  %v65_v19 = vcombine.high %v49_v13, %v3052_v3  ;;  %s2142_s8 = sshll.u32 %s2253_s7, 4  ;;  %s2143_s8 = int_to_ptr.vmem [resolvable:$true] %s2142_s8 }
  0x16   :  { %v68_v7 = vunpack.c.0.s8 %v67_v2  ;;  %v80_v21 = vcombine.high %v50_v18, %v3052_v3  ;;  %vm1114_vm1 = vcmask 1041409   ;;  %vm1116_vm2 = vcmask 1042434   ;;  %p2224_p9 = scmp.lt.s32.totalorder %s2143_s8, %s2143_s8 }
  0x17   :  { %3090 = vst [vmem:[#allocation11_spill] sm:$0xff] %v2288_v4  ;;  %v99_v8 = vunpack.c.0.s8 %v98_v6  ;;  %vm1118_vm3 = vcmask 1043459   ;;  %vm1120_vm4 = vcmask 1044484   ;;  %vm1122_vm5 = vcmask 1045509  }
  0x18   :  { %v2291_v9 = vsub.s32 %v68_v7, %v2288_v4  ;;  %vm1124_vm6 = vcmask 1046534   ;;  %vm1126_vm7 = vcmask 1047559   ;;  %vm1855_vm8 = vcmask 130112  }
  0x19   :  { %v2294_v12 = vsub.s32 %v99_v8, %v2288_v4  ;;  %vm1862_vm9 = vcmask 195712   ;;  %vm1869_vm10 = vcmask 261312   ;;  %vm1892_vm11 = vcmask 254976  }
  0x1a   :  { %v336_v15 = vrot.slane %v57_v10, %v2291_v9  ;;  %v351_v17 = vrot.slane %v58_v11, %v2291_v9  ;;  %v72_v20 = vrot.slane %v49_v13, %v2291_v9  ;;  %v87_v22 = vrot.slane %v50_v18, %v2291_v9 }
  0x1b   :  { %v343_v23 = vrot.slane %v329_v14, %v2291_v9  ;;  %v358_v24 = vrot.slane %v344_v16, %v2291_v9  ;;  %v79_v27 = vrot.slane %v65_v19, %v2291_v9  ;;  %v94_v28 = vrot.slane %v80_v21, %v2291_v9 }
  0x1c   :  { %v359_v25 = vcombine.low %v336_v15, %v351_v17  ;;  %v360_v26 = vcombine.high %v336_v15, %v351_v17  ;;  %v95_v29 = vcombine.low %v72_v20, %v87_v22  ;;  %v96_v30 = vcombine.high %v72_v20, %v87_v22 }
  0x1d   :  { %v375_v33 = vcombine.low %v343_v23, %v358_v24  ;;  %v376_v34 = vcombine.high %v343_v23, %v358_v24  ;;  %v111_v37 = vcombine.low %v79_v27, %v94_v28  ;;  %v112_v38 = vcombine.high %v79_v27, %v94_v28 }
  0x1e   :  { %v2309_v31 = vrot.slane %v359_v25, %v2294_v12  ;;  %v2312_v32 = vrot.slane %v360_v26, %v2294_v12  ;;  %v2315_v35 = vrot.slane %v95_v29, %v2294_v12  ;;  %v2318_v36 = vrot.slane %v96_v30, %v2294_v12 }
  0x1f   :  { %v2321_v39 = vrot.slane %v375_v33, %v2294_v12  ;;  %v2324_v40 = vrot.slane %v376_v34, %v2294_v12  ;;  %v2339_v45 = vrot.slane %v111_v37, %v2294_v12  ;;  %v2342_v46 = vrot.slane %v112_v38, %v2294_v12 }
  0x20   :  { %3091 = vst [vmem:[#allocation12_spill] sm:$0xff] %v2309_v31  ;;  %3092 = vst [vmem:[#allocation13_spill] sm:$0xff] %v2312_v32  ;;  %v2328_v41 = vcombine.high %v2309_v31, %v3052_v3  ;;  %v2332_v42 = vcombine.high %v2312_v32, %v3052_v3  ;;  %v826_v43 = vsel %vm601_vm0, %v2309_v31, 0.0  ;;  %v840_v44 = vsel %vm601_vm0, %v2312_v32, 0.0 }
  0x21   :  { %3093 = vst [vmem:[#allocation14_spill] sm:$0xff] %v2321_v39  ;;  %3094 = vst [vmem:[#allocation15_spill] sm:$0xff] %v2324_v40  ;;  %v2346_v47 = vcombine.high %v2321_v39, %v3052_v3  ;;  %v2350_v48 = vcombine.high %v2324_v40, %v3052_v3  ;;  %v827_v49 = vrot.slane %v826_v43, 4  ;;  %v841_v52 = vrot.slane %v840_v44, 4 }
  0x22   :  { %3095 = vst [vmem:[#allocation16_spill] sm:$0xff] %v2328_v41  ;;  %3096 = vst [vmem:[#allocation17_spill] sm:$0xff] %v2332_v42  ;;  %v833_v50 = vsel %vm601_vm0, %v2328_v41, 0.0  ;;  %v847_v53 = vsel %vm601_vm0, %v2332_v42, 0.0  ;;  %v854_v54 = vsel %vm601_vm0, %v2321_v39, 0.0  ;;  %v868_v62 = vsel %vm601_vm0, %v2324_v40, 0.0 }
  0x23   :  { %3097 = vst [vmem:[#allocation18_spill] sm:$0xff] %v2346_v47  ;;  %3098 = vst [vmem:[#allocation19_spill] sm:$0xff] %v2350_v48  ;;  %v834_v51 = vrot.slane %v833_v50, 4  ;;  %v828_v55 = vadd.f32 %v827_v49, %v826_v43  ;;  %v848_v56 = vrot.slane %v847_v53, 4  ;;  %v855_v57 = vrot.slane %v854_v54, 4 }
  0x24   :  { %v861_v58 = vsel %vm601_vm0, %v2346_v47, 0.0  ;;  %v842_v60 = vadd.f32 %v841_v52, %v840_v44  ;;  %v869_v5 = vrot.slane %v868_v62, 4  ;;  %v875_v10 = vsel %vm601_vm0, %v2350_v48, 0.0 }
  0x25   :  { %v835_v59 = vadd.f32 %v834_v51, %v833_v50  ;;  %v862_v61 = vrot.slane %v861_v58, 4  ;;  %v829_v63 = vrot.slane %v828_v55, 2  ;;  %v849_v1 = vadd.f32 %v848_v56, %v847_v53 }
  0x26   :  { %v856_v2 = vadd.f32 %v855_v57, %v854_v54  ;;  %v843_v7 = vrot.slane %v842_v60, 2  ;;  %v870_v15 = vadd.f32 %v869_v5, %v868_v62  ;;  %v876_v19 = vrot.slane %v875_v10, 4 }
  0x27   :  { %v836_v6 = vrot.slane %v835_v59, 2  ;;  %v863_v8 = vadd.f32 %v862_v61, %v861_v58  ;;  %v830_v11 = vadd.f32 %v829_v63, %v828_v55  ;;  %v850_v13 = vrot.slane %v849_v1, 2 }
  0x28   :  { %v857_v14 = vrot.slane %v856_v2, 2  ;;  %v844_v17 = vadd.f32 %v843_v7, %v842_v60  ;;  %v871_v23 = vrot.slane %v870_v15, 2  ;;  %v877_v27 = vadd.f32 %v876_v19, %v875_v10 }
  0x29   :  { %v837_v16 = vadd.f32 %v836_v6, %v835_v59  ;;  %v864_v18 = vrot.slane %v863_v8, 2  ;;  %v831_v20 = vrot.slane %v830_v11, 1  ;;  %v851_v21 = vadd.f32 %v850_v13, %v849_v1 }
  0x2a   :  { %v858_v22 = vadd.f32 %v857_v14, %v856_v2  ;;  %v845_v25 = vrot.slane %v844_v17, 1  ;;  %v872_v33 = vadd.f32 %v871_v23, %v870_v15  ;;  %v878_v43 = vrot.slane %v877_v27, 2 }
  0x2b   :  { %v838_v24 = vrot.slane %v837_v16, 1  ;;  %v865_v26 = vadd.f32 %v864_v18, %v863_v8  ;;  %v832_v28 = vadd.f32 %v831_v20, %v830_v11  ;;  %v852_v29 = vrot.slane %v851_v21, 1 }
  0x2c   :  { %v859_v30 = vrot.slane %v858_v22, 1  ;;  %v846_v37 = vadd.f32 %v845_v25, %v844_v17  ;;  %v873_v50 = vrot.slane %v872_v33, 1  ;;  %v2366_v51 = vcombine.high %v2315_v35, %v3052_v3 }
  0x2d   :  { %v839_v34 = vadd.f32 %v838_v24, %v837_v16  ;;  %v866_v38 = vrot.slane %v865_v26, 1  ;;  %v853_v44 = vadd.f32 %v852_v29, %v851_v21  ;;  %v879_v53 = vadd.f32 %v878_v43, %v877_v27 }
  0x2e   :  { %v860_v49 = vadd.f32 %v859_v30, %v858_v22  ;;  %v2371_v55 = vcombine.high %v2318_v36, %v3052_v3  ;;  %v874_v56 = vadd.f32 %v873_v50, %v872_v33  ;;  %v2376_v58 = vcombine.high %v2339_v45, %v3052_v3 }
  0x2f   :  { %v867_v52 = vadd.f32 %v866_v38, %v865_v26  ;;  %v1149_v54 = vsel %vm1114_vm1, %v839_v34, %v832_v28  ;;  %v2380_v59 = vcombine.high %v2342_v46, %v3052_v3  ;;  %v880_v60 = vrot.slane %v879_v53, 1 }
  0x30   :  { %v1150_v57 = vsel %vm1116_vm2, %v846_v37, %v1149_v54  ;;  %v602_v62 = vsel %vm601_vm0, %v2315_v35, 0.0  ;;  %v609_v63 = vsel %vm601_vm0, %v2366_v51, 0.0  ;;  %v616_v6 = vsel %vm601_vm0, %v2318_v36, 0.0 }
  0x31   :  { %v1151_v61 = vsel %vm1118_vm3, %v853_v44, %v1150_v57  ;;  %v603_v2 = vrot.slane %v602_v62, 4  ;;  %v610_v5 = vrot.slane %v609_v63, 4  ;;  %v881_v7 = vadd.f32 %v880_v60, %v879_v53 }
  0x32   :  { %v1152_v1 = vsel %vm1120_vm4, %v860_v49, %v1151_v61  ;;  %v617_v10 = vrot.slane %v616_v6, 4  ;;  %v623_v11 = vsel %vm601_vm0, %v2371_v55, 0.0  ;;  %v630_v19 = vsel %vm601_vm0, %v2339_v45, 0.0 }
  0x33   :  { %v1153_v8 = vsel %vm1122_vm5, %v867_v52, %v1152_v1  ;;  %v604_v14 = vadd.f32 %v603_v2, %v602_v62  ;;  %v611_v15 = vadd.f32 %v610_v5, %v609_v63  ;;  %v624_v16 = vrot.slane %v623_v11, 4 }
  0x34   :  { %v1154_v13 = vsel %vm1124_vm6, %v874_v56, %v1153_v8  ;;  %v618_v18 = vadd.f32 %v617_v10, %v616_v6  ;;  %v637_v20 = vsel %vm601_vm0, %v2376_v58, 0.0  ;;  %v631_v24 = vrot.slane %v630_v19, 4  ;;  %v59_v8 = vld [vmem:[#allocation5 + $0x50] sm:$0xff] }
  0x35   :  { %v1155_v17 = vsel %vm1126_vm7, %v881_v7, %v1154_v13  ;;  %v605_v21 = vrot.slane %v604_v14, 2  ;;  %v612_v22 = vrot.slane %v611_v15, 2  ;;  %v625_v23 = vadd.f32 %v624_v16, %v623_v11 }
  0x36   :  { %1820 = vadd.xlane.f32.xlu1 %v1155_v17  ;;  %v619_v25 = vrot.slane %v618_v18, 2  ;;  %v638_v26 = vrot.slane %v637_v20, 4  ;;  %v644_v27 = vsel %vm601_vm0, %v2342_v46, 0.0  ;;  %v651_v28 = vsel %vm601_vm0, %v2380_v59, 0.0 }
  0x37   :  { %v606_v29 = vadd.f32 %v605_v21, %v604_v14  ;;  %v613_v30 = vadd.f32 %v612_v22, %v611_v15  ;;  %v626_v33 = vrot.slane %v625_v23, 2  ;;  %v632_v34 = vadd.f32 %v631_v24, %v630_v19  ;;  %v60_v19 = vld [vmem:[#allocation5 + $0x58] sm:$0xff] }
  0x38   :  { %v620_v37 = vadd.f32 %v619_v25, %v618_v18  ;;  %v639_v38 = vadd.f32 %v638_v26, %v637_v20  ;;  %v645_v43 = vrot.slane %v644_v27, 4  ;;  %v652_v44 = vrot.slane %v651_v28, 4  ;;  %v51_v20 = vld [vmem:[#allocation5 + $0x10] sm:$0xff] }
  0x39   :  { %v607_v49 = vrot.slane %v606_v29, 1  ;;  %v614_v50 = vrot.slane %v613_v30, 1  ;;  %v627_v52 = vadd.f32 %v626_v33, %v625_v23  ;;  %v633_v53 = vrot.slane %v632_v34, 2  ;;  %v52_v33 = vld [vmem:[#allocation5 + $0x18] sm:$0xff] }
  0x3a   :  { %v621_v54 = vrot.slane %v620_v37, 1  ;;  %v640_v56 = vrot.slane %v639_v38, 2  ;;  %v646_v57 = vadd.f32 %v645_v43, %v644_v27  ;;  %v653_v60 = vadd.f32 %v652_v44, %v651_v28 }
  0x3b   :  { %v608_v61 = vadd.f32 %v607_v49, %v606_v29  ;;  %v615_v62 = vadd.f32 %v614_v50, %v613_v30  ;;  %v628_v63 = vrot.slane %v627_v52, 1  ;;  %v634_v1 = vadd.f32 %v633_v53, %v632_v34 }
  0x3c   :  { %v622_v2 = vadd.f32 %v621_v54, %v620_v37  ;;  %v641_v5 = vadd.f32 %v640_v56, %v639_v38  ;;  %v647_v6 = vrot.slane %v646_v57, 2  ;;  %v654_v7 = vrot.slane %v653_v60, 2 }
  0x3d   :  { %v629_v10 = vadd.f32 %v628_v63, %v627_v52  ;;  %v635_v11 = vrot.slane %v634_v1, 1  ;;  %v1115_v13 = vsel %vm1114_vm1, %v615_v62, %v608_v61  ;;  %v395_v14 = vcombine.high %v59_v8, %v3052_v3 }
  0x3e   :  { %v642_v15 = vrot.slane %v641_v5, 1  ;;  %v648_v16 = vadd.f32 %v647_v6, %v646_v57  ;;  %v655_v17 = vadd.f32 %v654_v7, %v653_v60  ;;  %v1117_v18 = vsel %vm1116_vm2, %v622_v2, %v1115_v13 }
  0x3f   :  { %v636_v21 = vadd.f32 %v635_v11, %v634_v1  ;;  %v1119_v22 = vsel %vm1118_vm3, %v629_v10, %v1117_v18  ;;  %v402_v23 = vrot.slane %v59_v8, %v2291_v9  ;;  %v409_v24 = vrot.slane %v395_v14, %v2291_v9 }
  0x40   :  { %v643_v25 = vadd.f32 %v642_v15, %v641_v5  ;;  %v649_v26 = vrot.slane %v648_v16, 1  ;;  %v656_v27 = vrot.slane %v655_v17, 1  ;;  %v410_v28 = vcombine.high %v60_v19, %v3052_v3 }
  0x41   :  { %v1121_v29 = vsel %vm1120_vm4, %v636_v21, %v1119_v22  ;;  %v417_v30 = vrot.slane %v60_v19, %v2291_v9  ;;  %v131_v34 = vcombine.high %v51_v20, %v3052_v3  ;;  %v2414_v37 = vrot.slane %v51_v20, %v2291_v9 }
  0x42   :  { %v650_v38 = vadd.f32 %v649_v26, %v648_v16  ;;  %v657_v43 = vadd.f32 %v656_v27, %v655_v17  ;;  %v1123_v44 = vsel %vm1122_vm5, %v643_v25, %v1121_v29  ;;  %v424_v49 = vrot.slane %v410_v28, %v2291_v9 }
  0x43   :  { %v425_v50 = vcombine.low %v402_v23, %v417_v30  ;;  %v426_v52 = vcombine.high %v402_v23, %v417_v30  ;;  %v2419_v53 = vrot.slane %v131_v34, %v2291_v9  ;;  %v146_v54 = vcombine.high %v52_v33, %v3052_v3 }
  0x44   :  { %v1125_v56 = vsel %vm1124_vm6, %v650_v38, %v1123_v44  ;;  %v441_v57 = vcombine.low %v409_v24, %v424_v49  ;;  %v442_v60 = vcombine.high %v409_v24, %v424_v49  ;;  %v2424_v61 = vrot.slane %v52_v33, %v2291_v9 }
  0x45   :  { %v1127_v62 = vsel %vm1126_vm7, %v657_v43, %v1125_v56  ;;  %v2428_v63 = vrot.slane %v425_v50, %v2294_v12  ;;  %v2431_v1 = vrot.slane %v426_v52, %v2294_v12  ;;  %v2434_v2 = vrot.slane %v146_v54, %v2291_v9 }
  0x46   :  { %1812 = vadd.xlane.f32.xlu0 %v1127_v62  ;;  %v2437_v5 = vrot.slane %v441_v57, %v2294_v12  ;;  %v2440_v6 = vrot.slane %v442_v60, %v2294_v12  ;;  %v161_v7 = vcombine.low %v2414_v37, %v2424_v61  ;;  %v162_v8 = vcombine.high %v2414_v37, %v2424_v61 }
  0x47   :  { %v2448_v10 = vcombine.high %v2428_v63, %v3052_v3  ;;  %v2452_v11 = vcombine.high %v2431_v1, %v3052_v3  ;;  %v882_v13 = vsel %vm601_vm0, %v2428_v63, 0.0  ;;  %v896_v14 = vsel %vm601_vm0, %v2431_v1, 0.0 }
  0x48   :  { %v2460_v15 = vcombine.high %v2437_v5, %v3052_v3  ;;  %v2464_v16 = vcombine.high %v2440_v6, %v3052_v3  ;;  %v883_v17 = vrot.slane %v882_v13, 4  ;;  %v897_v18 = vrot.slane %v896_v14, 4 }
  0x49   :  { %v889_v19 = vsel %vm601_vm0, %v2448_v10, 0.0  ;;  %v903_v20 = vsel %vm601_vm0, %v2452_v11, 0.0  ;;  %v910_v21 = vsel %vm601_vm0, %v2437_v5, 0.0  ;;  %v924_v22 = vsel %vm601_vm0, %v2440_v6, 0.0 }
  0x4a   :  { %v884_v23 = vadd.f32 %v883_v17, %v882_v13  ;;  %v890_v24 = vrot.slane %v889_v19, 4  ;;  %v898_v25 = vadd.f32 %v897_v18, %v896_v14  ;;  %v904_v26 = vrot.slane %v903_v20, 4 }
  0x4b   :  { %v911_v27 = vrot.slane %v910_v21, 4  ;;  %v917_v28 = vsel %vm601_vm0, %v2460_v15, 0.0  ;;  %v925_v29 = vrot.slane %v924_v22, 4  ;;  %v931_v30 = vsel %vm601_vm0, %v2464_v16, 0.0 }
  0x4c   :  { %v885_v33 = vrot.slane %v884_v23, 2  ;;  %v891_v34 = vadd.f32 %v890_v24, %v889_v19  ;;  %v899_v37 = vrot.slane %v898_v25, 2  ;;  %v905_v38 = vadd.f32 %v904_v26, %v903_v20 }
  0x4d   :  { %v912_v43 = vadd.f32 %v911_v27, %v910_v21  ;;  %v918_v44 = vrot.slane %v917_v28, 4  ;;  %v926_v49 = vadd.f32 %v925_v29, %v924_v22  ;;  %v932_v50 = vrot.slane %v931_v30, 4 }
  0x4e   :  { %v886_v52 = vadd.f32 %v885_v33, %v884_v23  ;;  %v892_v54 = vrot.slane %v891_v34, 2  ;;  %v900_v56 = vadd.f32 %v899_v37, %v898_v25  ;;  %v906_v57 = vrot.slane %v905_v38, 2 }
  0x4f   :  { %v913_v60 = vrot.slane %v912_v43, 2  ;;  %v919_v61 = vadd.f32 %v918_v44, %v917_v28  ;;  %v927_v62 = vrot.slane %v926_v49, 2  ;;  %v933_v13 = vadd.f32 %v932_v50, %v931_v30 }
  0x50   :  { %v887_v14 = vrot.slane %v886_v52, 1  ;;  %v893_v17 = vadd.f32 %v892_v54, %v891_v34  ;;  %v901_v18 = vrot.slane %v900_v56, 1  ;;  %v907_v0 = vadd.f32 %v906_v57, %v905_v38 }
  0x51   :  { %v914_v3 = vadd.f32 %v913_v60, %v912_v43  ;;  %v920_v19 = vrot.slane %v919_v61, 2  ;;  %v928_v24 = vadd.f32 %v927_v62, %v926_v49  ;;  %v934_v20 = vrot.slane %v933_v13, 2 }
  0x52   :  { %v888_v21 = vadd.f32 %v887_v14, %v886_v52  ;;  %v894_v26 = vrot.slane %v893_v17, 1  ;;  %v902_v22 = vadd.f32 %v901_v18, %v900_v56  ;;  %v908_v27 = vrot.slane %v907_v0, 1 }
  0x53   :  { %v915_v23 = vrot.slane %v914_v3, 1  ;;  %v921_v29 = vadd.f32 %v920_v19, %v919_v61  ;;  %v929_v25 = vrot.slane %v928_v24, 1  ;;  %v935_v33 = vadd.f32 %v934_v20, %v933_v13 }
  0x54   :  { %v895_v37 = vadd.f32 %v894_v26, %v893_v17  ;;  %v909_v28 = vadd.f32 %v908_v27, %v907_v0  ;;  %v2479_v30 = vrot.slane %v161_v7, %v2294_v12  ;;  %v2482_v34 = vrot.slane %v162_v8, %v2294_v12 }
  0x55   :  { %v916_v38 = vadd.f32 %v915_v23, %v914_v3  ;;  %v922_v43 = vrot.slane %v921_v29, 1  ;;  %v930_v44 = vadd.f32 %v929_v25, %v928_v24  ;;  %v936_v49 = vrot.slane %v935_v33, 1 }
  0x56   :  { %v1156_v50 = vsel %vm1114_vm1, %v895_v37, %v888_v21  ;;  %v177_v52 = vcombine.low %v2419_v53, %v2434_v2  ;;  %v178_v54 = vcombine.high %v2419_v53, %v2434_v2  ;;  %v3099_v56 = vmov 0.0  }
  0x57   :  { %v2491_v0 = vcombine.high %v2479_v30, %v3099_v56  ;;  %v923_v7 = vadd.f32 %v922_v43, %v921_v29  ;;  %v937_v57 = vadd.f32 %v936_v49, %v935_v33  ;;  %v1157_v8 = vsel %vm1116_vm2, %v902_v22, %v1156_v50 }
  0x58   :  { %v2496_v3 = vcombine.high %v2482_v34, %v3099_v56  ;;  %v1158_v60 = vsel %vm1118_vm3, %v909_v28, %v1157_v8  ;;  %v2500_v61 = vrot.slane %v177_v52, %v2294_v12  ;;  %v2503_v62 = vrot.slane %v178_v54, %v2294_v12 }
  0x59   :  { %v658_v53 = vsel %vm601_vm0, %v2479_v30, 0.0  ;;  %v1159_v2 = vsel %vm1120_vm4, %v916_v38, %v1158_v60  ;;  %v665_v14 = vsel %vm601_vm0, %v2491_v0, 0.0  ;;  %v672_v17 = vsel %vm601_vm0, %v2482_v34, 0.0 }
  0x5a   :  { %v659_v13 = vrot.slane %v658_v53, 4  ;;  %v1160_v18 = vsel %vm1122_vm5, %v923_v7, %v1159_v2  ;;  %v2515_v19 = vcombine.high %v2500_v61, %v3099_v56  ;;  %v2519_v24 = vcombine.high %v2503_v62, %v3099_v56 }
  0x5b   :  { %v666_v20 = vrot.slane %v665_v14, 4  ;;  %v1161_v21 = vsel %vm1124_vm6, %v930_v44, %v1160_v18  ;;  %v673_v22 = vrot.slane %v672_v17, 4  ;;  %v679_v27 = vsel %vm601_vm0, %v2496_v3, 0.0 }
  0x5c   :  { %v660_v26 = vadd.f32 %v659_v13, %v658_v53  ;;  %v1162_v23 = vsel %vm1126_vm7, %v937_v57, %v1161_v21  ;;  %v680_v25 = vrot.slane %v679_v27, 4  ;;  %v686_v33 = vsel %vm601_vm0, %v2500_v61, 0.0 }
  0x5d   :  { %v667_v29 = vadd.f32 %v666_v20, %v665_v14  ;;  %1822 = vadd.xlane.f32.xlu1 %v1162_v23  ;;  %v674_v28 = vadd.f32 %v673_v22, %v672_v17  ;;  %v687_v38 = vrot.slane %v686_v33, 4  ;;  %v693_v43 = vsel %vm601_vm0, %v2515_v19, 0.0 }
  0x5e   :  { %v661_v37 = vrot.slane %v660_v26, 2  ;;  %v681_v49 = vadd.f32 %v680_v25, %v679_v27  ;;  %v694_v50 = vrot.slane %v693_v43, 4  ;;  %v700_v52 = vsel %vm601_vm0, %v2503_v62, 0.0 }
  0x5f   :  { %v668_v44 = vrot.slane %v667_v29, 2  ;;  %v675_v7 = vrot.slane %v674_v28, 2  ;;  %v688_v57 = vadd.f32 %v687_v38, %v686_v33  ;;  %v701_v8 = vrot.slane %v700_v52, 4 }
  0x60   :  { %v662_v54 = vadd.f32 %v661_v37, %v660_v26  ;;  %v682_v53 = vrot.slane %v681_v49, 2  ;;  %v695_v2 = vadd.f32 %v694_v50, %v693_v43  ;;  %v707_v13 = vsel %vm601_vm0, %v2519_v24, 0.0  ;;  %v61_v43 = vld [vmem:[#allocation5 + $0x60] sm:$0xff] }
  0x61   :  { %v669_v60 = vadd.f32 %v668_v44, %v667_v29  ;;  %v676_v17 = vadd.f32 %v675_v7, %v674_v28  ;;  %v689_v18 = vrot.slane %v688_v57, 2  ;;  %v702_v20 = vadd.f32 %v701_v8, %v700_v52 }
  0x62   :  { %v663_v14 = vrot.slane %v662_v54, 1  ;;  %v683_v22 = vadd.f32 %v682_v53, %v681_v49  ;;  %v696_v27 = vrot.slane %v695_v2, 2  ;;  %v708_v23 = vrot.slane %v707_v13, 4  ;;  %v62_v53 = vld [vmem:[#allocation5 + $0x68] sm:$0xff] }
  0x63   :  { %v670_v21 = vrot.slane %v669_v60, 1  ;;  %v677_v4 = vrot.slane %v676_v17, 1  ;;  %v690_v26 = vadd.f32 %v689_v18, %v688_v57  ;;  %v703_v37 = vrot.slane %v702_v20, 2 }
  0x64   :  { %v664_v25 = vadd.f32 %v663_v14, %v662_v54  ;;  %v684_v38 = vrot.slane %v683_v22, 1  ;;  %v697_v29 = vadd.f32 %v696_v27, %v695_v2  ;;  %v709_v44 = vadd.f32 %v708_v23, %v707_v13  ;;  %v53_v2 = vld [vmem:[#allocation5 + $0x20] sm:$0xff] }
  0x65   :  { %v671_v33 = vadd.f32 %v670_v21, %v669_v60  ;;  %v678_v50 = vadd.f32 %v677_v4, %v676_v17  ;;  %v691_v48 = vrot.slane %v690_v26, 1  ;;  %v704_v40 = vadd.f32 %v703_v37, %v702_v20 }
  0x66   :  { %v461_v28 = vcombine.high %v61_v43, %v3099_v56  ;;  %v685_v7 = vadd.f32 %v684_v38, %v683_v22  ;;  %v698_v52 = vrot.slane %v697_v29, 1  ;;  %v710_v8 = vrot.slane %v709_v44, 2 }
  0x67   :  { %v1128_v49 = vsel %vm1114_vm1, %v671_v33, %v664_v25  ;;  %v692_v54 = vadd.f32 %v691_v48, %v690_v26  ;;  %v705_v14 = vrot.slane %v704_v40, 1  ;;  %v468_v60 = vrot.slane %v61_v43, %v2291_v9  ;;  %v54_v48 = vld [vmem:[#allocation5 + $0x28] sm:$0xff] }
  0x68   :  { %v1129_v57 = vsel %vm1116_vm2, %v678_v50, %v1128_v49  ;;  %v699_v13 = vadd.f32 %v698_v52, %v697_v29  ;;  %v711_v18 = vadd.f32 %v710_v8, %v709_v44  ;;  %v475_v17 = vrot.slane %v461_v28, %v2291_v9 }
  0x69   :  { %v1130_v4 = vsel %vm1118_vm3, %v685_v7, %v1129_v57  ;;  %v706_v20 = vadd.f32 %v705_v14, %v704_v40  ;;  %v476_v22 = vcombine.high %v62_v53, %v3099_v56  ;;  %v483_v27 = vrot.slane %v62_v53, %v2291_v9 }
  0x6a   :  { %v1131_v21 = vsel %vm1120_vm4, %v692_v54, %v1130_v4  ;;  %v712_v23 = vrot.slane %v711_v18, 1  ;;  %v197_v26 = vcombine.high %v53_v2, %v3099_v56  ;;  %v204_v37 = vrot.slane %v53_v2, %v2291_v9 }
  0x6b   :  { %v1132_v25 = vsel %vm1122_vm5, %v699_v13, %v1131_v21  ;;  %v490_v38 = vrot.slane %v476_v22, %v2291_v9  ;;  %v491_v29 = vcombine.low %v468_v60, %v483_v27  ;;  %v492_v40 = vcombine.high %v468_v60, %v483_v27 }
  0x6c   :  { %v1133_v33 = vsel %vm1124_vm6, %v706_v20, %v1132_v25  ;;  %v713_v44 = vadd.f32 %v712_v23, %v711_v18  ;;  %v2548_v43 = vrot.slane %v197_v26, %v2291_v9  ;;  %v212_v50 = vcombine.high %v54_v48, %v3099_v56 }
  0x6d   :  { %v219_v28 = vrot.slane %v54_v48, %v2291_v9  ;;  %v2553_v7 = vrot.slane %v491_v29, %v2294_v12  ;;  %v2556_v52 = vrot.slane %v492_v40, %v2294_v12  ;;  %v507_v8 = vcombine.low %v475_v17, %v490_v38 }
  0x6e   :  { %v508_v49 = vcombine.high %v475_v17, %v490_v38  ;;  %v1134_v53 = vsel %vm1126_vm7, %v713_v44, %v1133_v33  ;;  %v2560_v54 = vrot.slane %v212_v50, %v2291_v9  ;;  %vm2252_vm12 = vmmov 0  }
  0x6f   :  { %3100 = vst [vmem:[#allocation20_spill] sm:$0xff] %v2553_v7  ;;  %3101 = vst [vmem:[#allocation21_spill] sm:$0xff] %v2556_v52  ;;  %v227_v14 = vcombine.low %v204_v37, %v219_v28  ;;  %v228_v57 = vcombine.high %v204_v37, %v219_v28  ;;  %1814 = vadd.xlane.f32.xlu0 %v1134_v53  ;;  %v2563_v60 = vrot.slane %v507_v8, %v2294_v12  ;;  %vm1972_vm13 = vcmask 261120  }
  0x70   :  { %v2566_v2 = vrot.slane %v508_v49, %v2294_v12  ;;  %v2570_v13 = vcombine.high %v2553_v7, %v3099_v56  ;;  %v2574_v18 = vcombine.high %v2556_v52, %v3099_v56  ;;  %v938_v4 = vsel %vm601_vm0, %v2553_v7, 0.0 }
  0x71   :  { %3102 = vst [vmem:[#allocation22_spill] sm:$0xff] %v2563_v60  ;;  %v952_v17 = vsel %vm601_vm0, %v2556_v52, 0.0  ;;  %v2581_v20 = vrot.slane %v227_v14, %v2294_v12  ;;  %v2584_v21 = vrot.slane %v228_v57, %v2294_v12  ;;  %v2588_v22 = vcombine.high %v2563_v60, %v3099_v56 }
  0x72   :  { %3103 = vst [vmem:[#allocation23_spill] sm:$0xff] %v2566_v2  ;;  %3104 = vst [vmem:[#allocation24_spill] sm:$0xff] %v2570_v13  ;;  %v2592_v27 = vcombine.high %v2566_v2, %v3099_v56  ;;  %v939_v48 = vrot.slane %v938_v4, 4  ;;  %v945_v23 = vsel %vm601_vm0, %v2570_v13, 0.0  ;;  %v953_v26 = vrot.slane %v952_v17, 4 }
  0x73   :  { %3105 = vst [vmem:[#allocation25_spill] sm:$0xff] %v2574_v18  ;;  %3106 = vst [vmem:[#allocation26_spill] sm:$0xff] %v2581_v20  ;;  %v946_v25 = vrot.slane %v945_v23, 4  ;;  %v959_v37 = vsel %vm601_vm0, %v2574_v18, 0.0  ;;  %v966_v33 = vsel %vm601_vm0, %v2563_v60, 0.0  ;;  %v973_v44 = vsel %vm601_vm0, %v2588_v22, 0.0 }
  0x74   :  { %3107 = vst [vmem:[#allocation27_spill] sm:$0xff] %v2584_v21  ;;  %3108 = vst [vmem:[#allocation28_spill] sm:$0xff] %v2588_v22  ;;  %v940_v38 = vadd.f32 %v939_v48, %v938_v4  ;;  %v960_v29 = vrot.slane %v959_v37, 4  ;;  %v967_v40 = vrot.slane %v966_v33, 4  ;;  %v954_v28 = vadd.f32 %v953_v26, %v952_v17 }
  0x75   :  { %3109 = vst [vmem:[#allocation29_spill] sm:$0xff] %v2592_v27  ;;  %v947_v50 = vadd.f32 %v946_v25, %v945_v23  ;;  %v974_v8 = vrot.slane %v973_v44, 4  ;;  %v980_v49 = vsel %vm601_vm0, %v2566_v2, 0.0  ;;  %v987_v4 = vsel %vm601_vm0, %v2592_v27, 0.0 }
  0x76   :  { %v941_v53 = vrot.slane %v940_v38, 2  ;;  %v961_v14 = vadd.f32 %v960_v29, %v959_v37  ;;  %v968_v57 = vadd.f32 %v967_v40, %v966_v33  ;;  %v981_v52 = vrot.slane %v980_v49, 4 }
  0x77   :  { %v948_v18 = vrot.slane %v947_v50, 2  ;;  %v955_v13 = vrot.slane %v954_v28, 2  ;;  %v975_v7 = vadd.f32 %v974_v8, %v973_v44  ;;  %v988_v26 = vrot.slane %v987_v4, 4 }
  0x78   :  { %v942_v48 = vadd.f32 %v941_v53, %v940_v38  ;;  %v962_v60 = vrot.slane %v961_v14, 2  ;;  %v969_v47 = vrot.slane %v968_v57, 2  ;;  %v982_v22 = vadd.f32 %v981_v52, %v980_v49 }
  0x79   :  { %v949_v23 = vadd.f32 %v948_v18, %v947_v50  ;;  %v956_v17 = vadd.f32 %v955_v13, %v954_v28  ;;  %v976_v25 = vrot.slane %v975_v7, 2  ;;  %v989_v32 = vadd.f32 %v988_v26, %v987_v4 }
  0x7a   :  { %v943_v39 = vrot.slane %v942_v48, 1  ;;  %v963_v2 = vadd.f32 %v962_v60, %v961_v14  ;;  %v970_v42 = vadd.f32 %v969_v47, %v968_v57  ;;  %v983_v37 = vrot.slane %v982_v22, 2 }
  0x7b   :  { %v950_v33 = vrot.slane %v949_v23, 1  ;;  %v957_v29 = vrot.slane %v956_v17, 1  ;;  %v977_v40 = vadd.f32 %v976_v25, %v975_v7  ;;  %v990_v52 = vrot.slane %v989_v32, 2 }
  0x7c   :  { %v944_v44 = vadd.f32 %v943_v39, %v942_v48  ;;  %v964_v8 = vrot.slane %v963_v2, 1  ;;  %v971_v41 = vrot.slane %v970_v42, 1  ;;  %v984_v27 = vadd.f32 %v983_v37, %v982_v22 }
  0x7d   :  { %v951_v38 = vadd.f32 %v950_v33, %v949_v23  ;;  %v958_v53 = vadd.f32 %v957_v29, %v956_v17  ;;  %v978_v31 = vrot.slane %v977_v40, 1  ;;  %v243_v60 = vcombine.low %v2548_v43, %v2560_v54 }
  0x7e   :  { %v965_v18 = vadd.f32 %v964_v8, %v963_v2  ;;  %v972_v13 = vadd.f32 %v971_v41, %v970_v42  ;;  %v985_v50 = vrot.slane %v984_v27, 1  ;;  %v991_v28 = vadd.f32 %v990_v52, %v989_v32 }
  0x7f   :  { %v979_v47 = vadd.f32 %v978_v31, %v977_v40  ;;  %v1163_v49 = vsel %vm1114_vm1, %v951_v38, %v944_v44  ;;  %v244_v39 = vcombine.high %v2548_v43, %v2560_v54  ;;  %v2613_v14 = vrot.slane %v243_v60, %v2294_v12 }
  0x80   :  { %v986_v7 = vadd.f32 %v985_v50, %v984_v27  ;;  %v1164_v22 = vsel %vm1116_vm2, %v958_v53, %v1163_v49  ;;  %v2617_v41 = vcombine.high %v2581_v20, %v3099_v56  ;;  %v992_v42 = vrot.slane %v991_v28, 1 }
  0x81   :  { %3110 = vst [vmem:[#allocation30_spill] sm:$0xff] %v2613_v14  ;;  %v1165_v2 = vsel %vm1118_vm3, %v965_v18, %v1164_v22  ;;  %v2621_v31 = vrot.slane %v244_v39, %v2294_v12  ;;  %v2625_v32 = vcombine.high %v2584_v21, %v3099_v56  ;;  %v2630_v54 = vcombine.high %v2613_v14, %v3099_v56 }
  0x82   :  { %3111 = vst [vmem:[#allocation31_spill] sm:$0xff] %v2617_v41  ;;  %v1166_v43 = vsel %vm1120_vm4, %v972_v13, %v1165_v2  ;;  %v714_v27 = vsel %vm601_vm0, %v2581_v20, 0.0  ;;  %v721_v57 = vsel %vm601_vm0, %v2617_v41, 0.0  ;;  %v993_v4 = vadd.f32 %v992_v42, %v991_v28 }
  0x83   :  { %3112 = vst [vmem:[#allocation32_spill] sm:$0xff] %v2621_v31  ;;  %3113 = vst [vmem:[#allocation33_spill] sm:$0xff] %v2625_v32  ;;  %v1167_v48 = vsel %vm1122_vm5, %v979_v47, %v1166_v43  ;;  %v2639_v23 = vcombine.high %v2621_v31, %v3099_v56  ;;  %v715_v17 = vrot.slane %v714_v27, 4  ;;  %v722_v26 = vrot.slane %v721_v57, 4 }
  0x84   :  { %3114 = vst [vmem:[#allocation34_spill] sm:$0xff] %v2630_v54  ;;  %v1168_v25 = vsel %vm1124_vm6, %v986_v7, %v1167_v48  ;;  %v728_v37 = vsel %vm601_vm0, %v2584_v21, 0.0  ;;  %v735_v33 = vsel %vm601_vm0, %v2625_v32, 0.0  ;;  %v742_v53 = vsel %vm601_vm0, %v2613_v14, 0.0 }
  0x85   :  { %3115 = vst [vmem:[#allocation35_spill] sm:$0xff] %v2639_v23  ;;  %v1169_v29 = vsel %vm1126_vm7, %v993_v4, %v1168_v25  ;;  %v716_v40 = vadd.f32 %v715_v17, %v714_v27  ;;  %v729_v44 = vrot.slane %v728_v37, 4  ;;  %v736_v8 = vrot.slane %v735_v33, 4 }
  0x86   :  { %1824 = vadd.xlane.f32.xlu1 %v1169_v29  ;;  %v723_v38 = vadd.f32 %v722_v26, %v721_v57  ;;  %v749_v52 = vsel %vm601_vm0, %v2630_v54, 0.0  ;;  %v756_v18 = vsel %vm601_vm0, %v2621_v31, 0.0  ;;  %v743_v47 = vrot.slane %v742_v53, 4 }
  0x87   :  { %v717_v13 = vrot.slane %v716_v40, 2  ;;  %v730_v50 = vadd.f32 %v729_v44, %v728_v37  ;;  %v737_v60 = vadd.f32 %v736_v8, %v735_v33  ;;  %v750_v49 = vrot.slane %v749_v52, 4 }
  0x88   :  { %v724_v28 = vrot.slane %v723_v38, 2  ;;  %v757_v39 = vrot.slane %v756_v18, 4  ;;  %v763_v7 = vsel %vm601_vm0, %v2639_v23, 0.0  ;;  %v744_v43 = vadd.f32 %v743_v47, %v742_v53 }
  0x89   :  { %v718_v22 = vadd.f32 %v717_v13, %v716_v40  ;;  %v731_v42 = vrot.slane %v730_v50, 2  ;;  %v738_v2 = vrot.slane %v737_v60, 2  ;;  %v751_v57 = vadd.f32 %v750_v49, %v749_v52 }
  0x8a   :  { %v725_v27 = vadd.f32 %v724_v28, %v723_v38  ;;  %v758_v4 = vadd.f32 %v757_v39, %v756_v18  ;;  %v764_v48 = vrot.slane %v763_v7, 4  ;;  %v745_v37 = vrot.slane %v744_v43, 2  ;;  %v63_v38 = vld [vmem:[#allocation5 + $0x70] sm:$0xff] }
  0x8b   :  { %v719_v17 = vrot.slane %v718_v22, 1  ;;  %v732_v25 = vadd.f32 %v731_v42, %v730_v50  ;;  %v739_v26 = vadd.f32 %v738_v2, %v737_v60  ;;  %v752_v29 = vrot.slane %v751_v57, 2 }
  0x8c   :  { %v726_v33 = vrot.slane %v725_v27, 1  ;;  %v759_v44 = vrot.slane %v758_v4, 2  ;;  %v765_v8 = vadd.f32 %v764_v48, %v763_v7  ;;  %v746_v23 = vadd.f32 %v745_v37, %v744_v43  ;;  %v64_v7 = vld [vmem:[#allocation5 + $0x78] sm:$0xff] }
  0x8d   :  { %v720_v31 = vadd.f32 %v719_v17, %v718_v22  ;;  %v733_v54 = vrot.slane %v732_v25, 1  ;;  %v740_v14 = vrot.slane %v739_v26, 1  ;;  %v753_v13 = vadd.f32 %v752_v29, %v751_v57 }
  0x8e   :  { %v727_v40 = vadd.f32 %v726_v33, %v725_v27  ;;  %v760_v32 = vadd.f32 %v759_v44, %v758_v4  ;;  %v766_v53 = vrot.slane %v765_v8, 2  ;;  %v747_v47 = vrot.slane %v746_v23, 1  ;;  %v55_v27 = vld [vmem:[#allocation5 + $0x30] sm:$0xff] }
  0x8f   :  { %v734_v52 = vadd.f32 %v733_v54, %v732_v25  ;;  %v741_v18 = vadd.f32 %v740_v14, %v739_v26  ;;  %v527_v50 = vcombine.high %v63_v38, %v3099_v56  ;;  %v754_v60 = vrot.slane %v753_v13, 1  ;;  %v56_v25 = vld [vmem:[#allocation5 + $0x38] sm:$0xff] }
  0x90   :  { %v761_v28 = vrot.slane %v760_v32, 1  ;;  %v767_v49 = vadd.f32 %v766_v53, %v765_v8  ;;  %v1135_v39 = vsel %vm1114_vm1, %v727_v40, %v720_v31  ;;  %v748_v22 = vadd.f32 %v747_v47, %v746_v23 }
  0x91   :  { %v1136_v42 = vsel %vm1116_vm2, %v734_v52, %v1135_v39  ;;  %v534_v2 = vrot.slane %v63_v38, %v2291_v9  ;;  %v541_v43 = vrot.slane %v527_v50, %v2291_v9  ;;  %v755_v57 = vadd.f32 %v754_v60, %v753_v13 }
  0x92   :  { %v762_v54 = vadd.f32 %v761_v28, %v760_v32  ;;  %v768_v14 = vrot.slane %v767_v49, 1  ;;  %v1137_v4 = vsel %vm1118_vm3, %v741_v18, %v1136_v42  ;;  %v542_v17 = vcombine.high %v64_v7, %v3099_v56 }
  0x93   :  { %v1138_v48 = vsel %vm1120_vm4, %v748_v22, %v1137_v4  ;;  %v549_v31 = vrot.slane %v64_v7, %v2291_v9  ;;  %v263_v23 = vcombine.high %v55_v27, %v3099_v56  ;;  %v270_v33 = vrot.slane %v55_v27, %v2291_v9 }
  0x94   :  { %v769_v26 = vadd.f32 %v768_v14, %v767_v49  ;;  %v1139_v37 = vsel %vm1122_vm5, %v755_v57, %v1138_v48  ;;  %v278_v29 = vcombine.high %v56_v25, %v3099_v56  ;;  %v556_v44 = vrot.slane %v542_v17, %v2291_v9 }
  0x95   :  { %v1140_v32 = vsel %vm1124_vm6, %v762_v54, %v1139_v37  ;;  %v557_v8 = vcombine.low %v534_v2, %v549_v31  ;;  %v558_v40 = vcombine.high %v534_v2, %v549_v31  ;;  %v2672_v53 = vrot.slane %v263_v23, %v2291_v9 }
  0x96   :  { %v1141_v13 = vsel %vm1126_vm7, %v769_v26, %v1140_v32  ;;  %v285_v38 = vrot.slane %v56_v25, %v2291_v9  ;;  %v2676_v52 = vrot.slane %v278_v29, %v2291_v9  ;;  %v573_v50 = vcombine.low %v541_v43, %v556_v44 }
  0x97   :  { %1816 = vadd.xlane.f32.xlu0 %v1141_v13  ;;  %v2679_v18 = vrot.slane %v557_v8, %v2294_v12  ;;  %v2682_v47 = vrot.slane %v558_v40, %v2294_v12  ;;  %v574_v60 = vcombine.high %v541_v43, %v556_v44  ;;  %vm2048_vm14 = vcmask 15360  }
  0x98   :  { %v293_v28 = vcombine.low %v270_v33, %v285_v38  ;;  %v294_v49 = vcombine.high %v270_v33, %v285_v38  ;;  %v309_v39 = vcombine.low %v2672_v53, %v2676_v52  ;;  %v2689_v9 = vrot.slane %v573_v50, %v2294_v12 }
  0x99   :  { %3116 = vst [vmem:[#allocation36_spill] sm:$0xff] %v2679_v18  ;;  %3117 = vst [vmem:[#allocation37_spill] sm:$0xff] %v2682_v47  ;;  %v2692_v22 = vrot.slane %v574_v60, %v2294_v12  ;;  %v2696_v42 = vcombine.high %v2679_v18, %v3099_v56  ;;  %v2700_v2 = vcombine.high %v2682_v47, %v3099_v56  ;;  %v994_v43 = vsel %vm601_vm0, %v2679_v18, 0.0 }
  0x9a   :  { %3118 = vst [vmem:[#allocation38_spill] sm:$0xff] %v2689_v9  ;;  %v1008_v27 = vsel %vm601_vm0, %v2682_v47, 0.0  ;;  %v2707_v57 = vrot.slane %v293_v28, %v2294_v12  ;;  %v2710_v54 = vrot.slane %v294_v49, %v2294_v12  ;;  %v2714_v14 = vcombine.high %v2689_v9, %v3099_v56 }
  0x9b   :  { %3119 = vst [vmem:[#allocation39_spill] sm:$0xff] %v2692_v22  ;;  %3120 = vst [vmem:[#allocation40_spill] sm:$0xff] %v2696_v42  ;;  %v2718_v4 = vcombine.high %v2692_v22, %v3099_v56  ;;  %v995_v48 = vrot.slane %v994_v43, 4  ;;  %v1001_v17 = vsel %vm601_vm0, %v2696_v42, 0.0  ;;  %v1009_v25 = vrot.slane %v1008_v27, 4 }
  0x9c   :  { %3121 = vst [vmem:[#allocation41_spill] sm:$0xff] %v2700_v2  ;;  %3122 = vst [vmem:[#allocation42_spill] sm:$0xff] %v2714_v14  ;;  %v1002_v31 = vrot.slane %v1001_v17, 4  ;;  %v1015_v23 = vsel %vm601_vm0, %v2700_v2, 0.0  ;;  %v1022_v26 = vsel %vm601_vm0, %v2689_v9, 0.0  ;;  %v1029_v32 = vsel %vm601_vm0, %v2714_v14, 0.0 }
  0x9d   :  { %3123 = vst [vmem:[#allocation43_spill] sm:$0xff] %v2718_v4  ;;  %v996_v37 = vadd.f32 %v995_v48, %v994_v43  ;;  %v1016_v33 = vrot.slane %v1015_v23, 4  ;;  %v1023_v29 = vrot.slane %v1022_v26, 4  ;;  %v1010_v8 = vadd.f32 %v1009_v25, %v1008_v27 }
  0x9e   :  { %v1003_v44 = vadd.f32 %v1002_v31, %v1001_v17  ;;  %v1030_v40 = vrot.slane %v1029_v32, 4  ;;  %v1036_v13 = vsel %vm601_vm0, %v2692_v22, 0.0  ;;  %v1043_v43 = vsel %vm601_vm0, %v2718_v4, 0.0 }
  0x9f   :  { %v997_v38 = vrot.slane %v996_v37, 2  ;;  %v1017_v50 = vadd.f32 %v1016_v33, %v1015_v23  ;;  %v1024_v60 = vadd.f32 %v1023_v29, %v1022_v26  ;;  %v1037_v28 = vrot.slane %v1036_v13, 4 }
  0xa0   :  { %v1004_v49 = vrot.slane %v1003_v44, 2  ;;  %v1011_v7 = vrot.slane %v1010_v8, 2  ;;  %v1031_v2 = vadd.f32 %v1030_v40, %v1029_v32  ;;  %v1044_v25 = vrot.slane %v1043_v43, 4 }
  0xa1   :  { %v998_v48 = vadd.f32 %v997_v38, %v996_v37  ;;  %v1018_v9 = vrot.slane %v1017_v50, 2  ;;  %v1025_v47 = vrot.slane %v1024_v60, 2  ;;  %v1038_v14 = vadd.f32 %v1037_v28, %v1036_v13 }
  0xa2   :  { %v1005_v17 = vadd.f32 %v1004_v49, %v1003_v44  ;;  %v1012_v27 = vadd.f32 %v1011_v7, %v1010_v8  ;;  %v1032_v31 = vrot.slane %v1031_v2, 2  ;;  %v1045_v21 = vadd.f32 %v1044_v25, %v1043_v43 }
  0xa3   :  { %v999_v42 = vrot.slane %v998_v48, 1  ;;  %v1019_v22 = vadd.f32 %v1018_v9, %v1017_v50  ;;  %v1026_v18 = vadd.f32 %v1025_v47, %v1024_v60  ;;  %v1039_v23 = vrot.slane %v1038_v14, 2 }
  0xa4   :  { %v1006_v26 = vrot.slane %v1005_v17, 1  ;;  %v1013_v33 = vrot.slane %v1012_v27, 1  ;;  %v1033_v29 = vadd.f32 %v1032_v31, %v1031_v2  ;;  %v1046_v13 = vrot.slane %v1045_v21, 2 }
  0xa5   :  { %v1000_v32 = vadd.f32 %v999_v42, %v998_v48  ;;  %v1020_v40 = vrot.slane %v1019_v22, 1  ;;  %v1027_v41 = vrot.slane %v1026_v18, 1  ;;  %v1040_v4 = vadd.f32 %v1039_v23, %v1038_v14 }
  0xa6   :  { %v1007_v37 = vadd.f32 %v1006_v26, %v1005_v17  ;;  %v1014_v38 = vadd.f32 %v1013_v33, %v1012_v27  ;;  %v1034_v20 = vrot.slane %v1033_v29, 1  ;;  %v2733_v28 = vrot.slane %v309_v39, %v2294_v12 }
  0xa7   :  { %v1021_v44 = vadd.f32 %v1020_v40, %v1019_v22  ;;  %v1028_v7 = vadd.f32 %v1027_v41, %v1026_v18  ;;  %v1041_v8 = vrot.slane %v1040_v4, 1  ;;  %v1047_v9 = vadd.f32 %v1046_v13, %v1045_v21 }
  0xa8   :  { %v1035_v47 = vadd.f32 %v1034_v20, %v1033_v29  ;;  %v1170_v50 = vsel %vm1114_vm1, %v1007_v37, %v1000_v32  ;;  %v3124_v42 = vcombine.high %v2672_v53, %v2676_v52  ;;  %v2745_v41 = vcombine.high %v2707_v57, %v3099_v56 }
  0xa9   :  { %v1042_v14 = vadd.f32 %v1041_v8, %v1040_v4  ;;  %v1171_v60 = vsel %vm1116_vm2, %v1014_v38, %v1170_v50  ;;  %v2749_v18 = vcombine.high %v2710_v54, %v3099_v56  ;;  %v1048_v20 = vrot.slane %v1047_v9, 1 }
  0xaa   :  { %v2740_v2 = vrot.slane %v3124_v42, %v2294_v12  ;;  %v1172_v21 = vsel %vm1118_vm3, %v1021_v44, %v1171_v60  ;;  %v2754_v39 = vcombine.high %v2733_v28, %v3099_v56  ;;  %v770_v52 = vsel %vm601_vm0, %v2707_v57, 0.0 }
  0xab   :  { %v1173_v53 = vsel %vm1120_vm4, %v1028_v7, %v1172_v21  ;;  %v777_v22 = vsel %vm601_vm0, %v2745_v41, 0.0  ;;  %v784_v4 = vsel %vm601_vm0, %v2710_v54, 0.0  ;;  %v1049_v49 = vadd.f32 %v1048_v20, %v1047_v9 }
  0xac   :  { %v2758_v12 = vcombine.high %v2740_v2, %v3099_v56  ;;  %v1174_v43 = vsel %vm1122_vm5, %v1035_v47, %v1173_v53  ;;  %v771_v48 = vrot.slane %v770_v52, 4  ;;  %v778_v17 = vrot.slane %v777_v22, 4 }
  0xad   :  { %v1175_v27 = vsel %vm1124_vm6, %v1042_v14, %v1174_v43  ;;  %v785_v31 = vrot.slane %v784_v4, 4  ;;  %v791_v25 = vsel %vm601_vm0, %v2749_v18, 0.0  ;;  %v798_v23 = vsel %vm601_vm0, %v2733_v28, 0.0 }
  0xae   :  { %3125 = vst [vmem:[#allocation44_spill] sm:$0xff] %v2758_v12  ;;  %v1176_v26 = vsel %vm1126_vm7, %v1049_v49, %v1175_v27  ;;  %v772_v33 = vadd.f32 %v771_v48, %v770_v52  ;;  %v779_v29 = vadd.f32 %v778_v17, %v777_v22  ;;  %v792_v32 = vrot.slane %v791_v25, 4 }
  0xaf   :  { %1826 = vadd.xlane.f32.xlu1 %v1176_v26  ;;  %v786_v40 = vadd.f32 %v785_v31, %v784_v4  ;;  %v799_v37 = vrot.slane %v798_v23, 4  ;;  %v805_v38 = vsel %vm601_vm0, %v2754_v39, 0.0  ;;  %v812_v13 = vsel %vm601_vm0, %v2740_v2, 0.0 }
  0xb0   :  { %v773_v44 = vrot.slane %v772_v33, 2  ;;  %v780_v7 = vrot.slane %v779_v29, 2  ;;  %v793_v8 = vadd.f32 %v792_v32, %v791_v25  ;;  %v806_v47 = vrot.slane %v805_v38, 4 }
  0xb1   :  { %v787_v9 = vrot.slane %v786_v40, 2  ;;  %v800_v50 = vadd.f32 %v799_v37, %v798_v23  ;;  %v813_v42 = vrot.slane %v812_v13, 4  ;;  %v819_v14 = vsel %vm601_vm0, %v2758_v12, 0.0 }
  0xb2   :  { %v774_v60 = vadd.f32 %v773_v44, %v772_v33  ;;  %v781_v20 = vadd.f32 %v780_v7, %v779_v29  ;;  %v794_v21 = vrot.slane %v793_v8, 2  ;;  %v807_v53 = vadd.f32 %v806_v47, %v805_v38 }
  0xb3   :  { %v788_v52 = vadd.f32 %v787_v9, %v786_v40  ;;  %v801_v22 = vrot.slane %v800_v50, 2  ;;  %v814_v4 = vadd.f32 %v813_v42, %v812_v13  ;;  %v820_v49 = vrot.slane %v819_v14, 4 }
  0xb4   :  { %v775_v43 = vrot.slane %v774_v60, 1  ;;  %v782_v48 = vrot.slane %v781_v20, 1  ;;  %v795_v17 = vadd.f32 %v794_v21, %v793_v8  ;;  %v808_v27 = vrot.slane %v807_v53, 2 }
  0xb5   :  { %v789_v31 = vrot.slane %v788_v52, 1  ;;  %v802_v25 = vadd.f32 %v801_v22, %v800_v50  ;;  %v815_v26 = vrot.slane %v814_v4, 2  ;;  %v821_v23 = vadd.f32 %v820_v49, %v819_v14 }
  0xb6   :  { %v776_v32 = vadd.f32 %v775_v43, %v774_v60  ;;  %v783_v37 = vadd.f32 %v782_v48, %v781_v20  ;;  %v796_v56 = vrot.slane %v795_v17, 1  ;;  %v809_v12 = vadd.f32 %v808_v27, %v807_v53 }
  0xb7   :  { %v790_v33 = vadd.f32 %v789_v31, %v788_v52  ;;  %v803_v29 = vrot.slane %v802_v25, 1  ;;  %v816_v44 = vadd.f32 %v815_v26, %v814_v4  ;;  %v822_v38 = vrot.slane %v821_v23, 2 }
  0xb8   :  { %v797_v40 = vadd.f32 %v796_v56, %v795_v17  ;;  %v810_v7 = vrot.slane %v809_v12, 1  ;;  %v1142_v13 = vsel %vm1114_vm1, %v783_v37, %v776_v32  ;;  %v1265_v8 = vsel %vm601_vm0, %v2479_v30, -inf }
  0xb9   :  { %v804_v47 = vadd.f32 %v803_v29, %v802_v25  ;;  %v817_v9 = vrot.slane %v816_v44, 1  ;;  %v823_v50 = vadd.f32 %v822_v38, %v821_v23  ;;  %v1143_v42 = vsel %vm1116_vm2, %v790_v33, %v1142_v13 }
  0xba   :  { %v811_v14 = vadd.f32 %v810_v7, %v809_v12  ;;  %v1144_v60 = vsel %vm1118_vm3, %v797_v40, %v1143_v42  ;;  %v1266_v20 = vrot.slane %v1265_v8, 4  ;;  %v1272_v21 = vsel %vm601_vm0, %v2491_v0, -inf }
  0xbb   :  { %v818_v53 = vadd.f32 %v817_v9, %v816_v44  ;;  %v824_v56 = vrot.slane %v823_v50, 1  ;;  %v1145_v52 = vsel %vm1120_vm4, %v804_v47, %v1144_v60  ;;  %v1273_v22 = vrot.slane %v1272_v21, 4 }
  0xbc   :  { %v1146_v4 = vsel %vm1122_vm5, %v811_v14, %v1145_v52  ;;  %v1267_v30 = vmax.f32 %v1265_v8, %v1266_v20  ;;  %v1279_v49 = vsel %vm601_vm0, %v2482_v34, -inf  ;;  %v1286_v12 = vsel %vm601_vm0, %v2496_v3, -inf }
  0xbd   :  { %v825_v43 = vadd.f32 %v824_v56, %v823_v50  ;;  %v1147_v48 = vsel %vm1124_vm6, %v818_v53, %v1146_v4  ;;  %v1274_v17 = vmax.f32 %v1272_v21, %v1273_v22  ;;  %v1280_v27 = vrot.slane %v1279_v49, 4 }
  0xbe   :  { %v1268_v0 = vrot.slane %v1267_v30, 2  ;;  %v1287_v31 = vrot.slane %v1286_v12, 4  ;;  %v1293_v25 = vsel %vm601_vm0, %v2500_v61, -inf  ;;  %v1300_v26 = vsel %vm601_vm0, %v2515_v19, -inf }
  0xbf   :  { %v1148_v23 = vsel %vm1126_vm7, %v825_v43, %v1147_v48  ;;  %v1275_v32 = vrot.slane %v1274_v17, 2  ;;  %v1281_v34 = vmax.f32 %v1279_v49, %v1280_v27  ;;  %v1294_v37 = vrot.slane %v1293_v25, 4 }
  0xc0   :  { %1818 = vadd.xlane.f32.xlu0 %v1148_v23  ;;  %v1269_v3 = vmax.f32 %v1267_v30, %v1268_v0  ;;  %v1288_v33 = vmax.f32 %v1286_v12, %v1287_v31  ;;  %v1301_v29 = vrot.slane %v1300_v26, 4  ;;  %v1307_v44 = vsel %vm601_vm0, %v2503_v62, -inf }
  0xc1   :  { %v1276_v38 = vmax.f32 %v1274_v17, %v1275_v32  ;;  %v1282_v40 = vrot.slane %v1281_v34, 2  ;;  %v1295_v7 = vmax.f32 %v1293_v25, %v1294_v37  ;;  %v1308_v13 = vrot.slane %v1307_v44, 4 }
  0xc2   :  { %v1270_v61 = vrot.slane %v1269_v3, 1  ;;  %v1289_v8 = vrot.slane %v1288_v33, 2  ;;  %v1302_v47 = vmax.f32 %v1300_v26, %v1301_v29  ;;  %v1314_v19 = vsel %vm601_vm0, %v2519_v24, -inf }
  0xc3   :  { %v1277_v9 = vrot.slane %v1276_v38, 1  ;;  %v1283_v50 = vmax.f32 %v1281_v34, %v1282_v40  ;;  %v1296_v42 = vrot.slane %v1295_v7, 2  ;;  %v1309_v14 = vmax.f32 %v1307_v44, %v1308_v13 }
  0xc4   :  { %v1271_v60 = vmax.f32 %v1269_v3, %v1270_v61  ;;  %v1290_v20 = vmax.f32 %v1288_v33, %v1289_v8  ;;  %v1303_v21 = vrot.slane %v1302_v47, 2  ;;  %v1315_v53 = vrot.slane %v1314_v19, 4 }
  0xc5   :  { %v1278_v56 = vmax.f32 %v1276_v38, %v1277_v9  ;;  %v1284_v62 = vrot.slane %v1283_v50, 1  ;;  %v1297_v52 = vmax.f32 %v1295_v7, %v1296_v42  ;;  %v1310_v22 = vrot.slane %v1309_v14, 2 }
  0xc6   :  { %v1291_v4 = vrot.slane %v1290_v20, 1  ;;  %v1304_v30 = vmax.f32 %v1302_v47, %v1303_v21  ;;  %v1316_v49 = vmax.f32 %v1314_v19, %v1315_v53  ;;  %v1209_v12 = vsel %vm601_vm0, %v2315_v35, -inf }
  0xc7   :  { %v1285_v43 = vmax.f32 %v1283_v50, %v1284_v62  ;;  %v1298_v24 = vrot.slane %v1297_v52, 1  ;;  %v1311_v48 = vmax.f32 %v1309_v14, %v1310_v22  ;;  %v1728_v17 = vsel %vm1114_vm1, %v1278_v56, %v1271_v60 }
  0xc8   :  { %v1292_v27 = vmax.f32 %v1290_v20, %v1291_v4  ;;  %v1305_v0 = vrot.slane %v1304_v30, 1  ;;  %v1317_v31 = vrot.slane %v1316_v49, 2  ;;  %v1210_v25 = vrot.slane %v1209_v12, 4 }
  0xc9   :  { %v1299_v26 = vmax.f32 %v1297_v52, %v1298_v24  ;;  %v1312_v23 = vrot.slane %v1311_v48, 1  ;;  %v1729_v32 = vsel %vm1116_vm2, %v1285_v43, %v1728_v17  ;;  %v1216_v34 = vsel %vm601_vm0, %v2366_v51, -inf }
  0xca   :  { %v1306_v37 = vmax.f32 %v1304_v30, %v1305_v0  ;;  %v1318_v3 = vmax.f32 %v1316_v49, %v1317_v31  ;;  %v1730_v35 = vsel %vm1118_vm3, %v1292_v27, %v1729_v32  ;;  %v1211_v33 = vmax.f32 %v1209_v12, %v1210_v25 }
  0xcb   :  { %v1313_v29 = vmax.f32 %v1311_v48, %v1312_v23  ;;  %v1731_v44 = vsel %vm1120_vm4, %v1299_v26, %v1730_v35  ;;  %v1217_v38 = vrot.slane %v1216_v34, 4  ;;  %v1223_v40 = vsel %vm601_vm0, %v2318_v36, -inf }
  0xcc   :  { %v1319_v7 = vrot.slane %v1318_v3, 1  ;;  %v1732_v13 = vsel %vm1122_vm5, %v1306_v37, %v1731_v44  ;;  %v1212_v61 = vrot.slane %v1211_v33, 2  ;;  %v1224_v8 = vrot.slane %v1223_v40, 4 }
  0xcd   :  { %v1733_v47 = vsel %vm1124_vm6, %v1313_v29, %v1732_v13  ;;  %v1218_v51 = vmax.f32 %v1216_v34, %v1217_v38  ;;  %v1230_v19 = vsel %vm601_vm0, %v2371_v55, -inf  ;;  %v1237_v9 = vsel %vm601_vm0, %v2339_v45, -inf }
  0xce   :  { %v1320_v50 = vmax.f32 %v1318_v3, %v1319_v7  ;;  %v1213_v42 = vmax.f32 %v1211_v33, %v1212_v61  ;;  %v1225_v14 = vmax.f32 %v1223_v40, %v1224_v8  ;;  %v1231_v60 = vrot.slane %v1230_v19, 4 }
  0xcf   :  { %v1219_v20 = vrot.slane %v1218_v51, 2  ;;  %v1238_v36 = vrot.slane %v1237_v9, 4  ;;  %v1244_v21 = vsel %vm601_vm0, %v2376_v58, -inf  ;;  %v1251_v53 = vsel %vm601_vm0, %v2342_v46, -inf }
  0xd0   :  { %v1734_v56 = vsel %vm1126_vm7, %v1320_v50, %v1733_v47  ;;  %v1214_v62 = vrot.slane %v1213_v42, 1  ;;  %v1226_v52 = vrot.slane %v1225_v14, 2  ;;  %v1232_v55 = vmax.f32 %v1230_v19, %v1231_v60 }
  0xd1   :  { %1904 = vmax.xlane.f32.xlu1 %v1734_v56  ;;  %v1220_v22 = vmax.f32 %v1218_v51, %v1219_v20  ;;  %v1239_v45 = vmax.f32 %v1237_v9, %v1238_v36  ;;  %v1245_v4 = vrot.slane %v1244_v21, 4  ;;  %v1252_v30 = vrot.slane %v1251_v53, 4 }
  0xd2   :  { %v1215_v49 = vmax.f32 %v1213_v42, %v1214_v62  ;;  %v1227_v12 = vmax.f32 %v1225_v14, %v1226_v52  ;;  %v1233_v43 = vrot.slane %v1232_v55, 2  ;;  %v1258_v24 = vsel %vm601_vm0, %v2380_v59, -inf }
  0xd3   :  { %v1221_v58 = vrot.slane %v1220_v22, 1  ;;  %v1240_v48 = vrot.slane %v1239_v45, 2  ;;  %v1246_v17 = vmax.f32 %v1244_v21, %v1245_v4  ;;  %v1253_v46 = vmax.f32 %v1251_v53, %v1252_v30 }
  0xd4   :  { %v1228_v27 = vrot.slane %v1227_v12, 1  ;;  %v1234_v0 = vmax.f32 %v1232_v55, %v1233_v43  ;;  %v1259_v31 = vrot.slane %v1258_v24, 4  ;;  %v1489_v25 = vsel %vm601_vm0, %v2428_v63, -inf }
  0xd5   :  { %v1222_v26 = vmax.f32 %v1220_v22, %v1221_v58  ;;  %v1241_v23 = vmax.f32 %v1239_v45, %v1240_v48  ;;  %v1247_v32 = vrot.slane %v1246_v17, 2  ;;  %v1254_v34 = vrot.slane %v1253_v46, 2 }
  0xd6   :  { %v1229_v37 = vmax.f32 %v1227_v12, %v1228_v27  ;;  %v1235_v3 = vrot.slane %v1234_v0, 1  ;;  %v1260_v35 = vmax.f32 %v1258_v24, %v1259_v31  ;;  %v1490_v33 = vrot.slane %v1489_v25, 4 }
  0xd7   :  { %v1242_v29 = vrot.slane %v1241_v23, 1  ;;  %v1248_v59 = vmax.f32 %v1246_v17, %v1247_v32  ;;  %v1255_v44 = vmax.f32 %v1253_v46, %v1254_v34  ;;  %v1721_v38 = vsel %vm1114_vm1, %v1222_v26, %v1215_v49  ;;  %v3126_v26 = vld [vmem:[#allocation12_spill] sm:$0xff] }
  0xd8   :  { %v1236_v40 = vmax.f32 %v1234_v0, %v1235_v3  ;;  %v1261_v7 = vrot.slane %v1260_v35, 2  ;;  %v1722_v13 = vsel %vm1116_vm2, %v1229_v37, %v1721_v38  ;;  %v1491_v61 = vmax.f32 %v1489_v25, %v1490_v33 }
  0xd9   :  { %v1243_v8 = vmax.f32 %v1241_v23, %v1242_v29  ;;  %v1249_v63 = vrot.slane %v1248_v59, 1  ;;  %v1256_v47 = vrot.slane %v1255_v44, 1  ;;  %v1496_v51 = vsel %vm601_vm0, %v2448_v10, -inf }
  0xda   :  { %v1262_v19 = vmax.f32 %v1260_v35, %v1261_v7  ;;  %v1723_v9 = vsel %vm1118_vm3, %v1236_v40, %v1722_v13  ;;  %v1492_v50 = vrot.slane %v1491_v61, 2  ;;  %v1497_v42 = vrot.slane %v1496_v51, 4 }
  0xdb   :  { %v1250_v14 = vmax.f32 %v1248_v59, %v1249_v63  ;;  %v1257_v60 = vmax.f32 %v1255_v44, %v1256_v47  ;;  %v1724_v20 = vsel %vm1120_vm4, %v1243_v8, %v1723_v9  ;;  %v1503_v36 = vsel %vm601_vm0, %v2431_v1, -inf }
  0xdc   :  { %v1263_v21 = vrot.slane %v1262_v19, 1  ;;  %v1493_v53 = vmax.f32 %v1491_v61, %v1492_v50  ;;  %v1498_v56 = vmax.f32 %v1496_v51, %v1497_v42  ;;  %v1504_v62 = vrot.slane %v1503_v36, 4  ;;  %v3127_v42 = vld [vmem:[#allocation16_spill] sm:$0xff] }
  0xdd   :  { %v1725_v52 = vsel %vm1122_vm5, %v1250_v14, %v1724_v20  ;;  %v1510_v10 = vsel %vm601_vm0, %v2452_v11, -inf  ;;  %v1517_v55 = vsel %vm601_vm0, %v2437_v5, -inf  ;;  %v1524_v22 = vsel %vm601_vm0, %v2460_v15, -inf }
  0xde   :  { %v1264_v45 = vmax.f32 %v1262_v19, %v1263_v21  ;;  %v1726_v4 = vsel %vm1124_vm6, %v1257_v60, %v1725_v52  ;;  %v1494_v30 = vrot.slane %v1493_v53, 1  ;;  %v1499_v1 = vrot.slane %v1498_v56, 2 }
  0xdf   :  { %v1505_v49 = vmax.f32 %v1503_v36, %v1504_v62  ;;  %v1511_v12 = vrot.slane %v1510_v10, 4  ;;  %v1518_v43 = vrot.slane %v1517_v55, 4  ;;  %v1525_v24 = vrot.slane %v1524_v22, 4 }
  0xe0   :  { %v1727_v58 = vsel %vm1126_vm7, %v1264_v45, %v1726_v4  ;;  %v1495_v48 = vmax.f32 %v1493_v53, %v1494_v30  ;;  %v1500_v17 = vmax.f32 %v1498_v56, %v1499_v1  ;;  %v1531_v11 = vsel %vm601_vm0, %v2440_v6, -inf  ;;  %v3129_v45 = vld [vmem:[#allocation17_spill] sm:$0xff]  ;;  %v3130_v30 = vld [vmem:[#allocation14_spill] sm:$0xff] }
  0xe1   :  { %1902 = vmax.xlane.f32.xlu0 %v1727_v58  ;;  %v1506_v5 = vrot.slane %v1505_v49, 2  ;;  %v1512_v46 = vmax.f32 %v1510_v10, %v1511_v12  ;;  %v1519_v15 = vmax.f32 %v1517_v55, %v1518_v43  ;;  %v1526_v27 = vmax.f32 %v1524_v22, %v1525_v24  ;;  %v3128_v55 = vld [vmem:[#allocation13_spill] sm:$0xff] }
  0xe2   :  { %v1501_v0 = vrot.slane %v1500_v17, 1  ;;  %v1532_v31 = vrot.slane %v1531_v11, 4  ;;  %v1538_v25 = vsel %vm601_vm0, %v2464_v16, -inf  ;;  %v1433_v23 = vsel %vm601_vm0, %v3126_v26, -inf  ;;  %v3131_v26 = vld [vmem:[#allocation18_spill] sm:$0xff] }
  0xe3   :  { %v1507_v32 = vmax.f32 %v1505_v49, %v1506_v5  ;;  %v1513_v34 = vrot.slane %v1512_v46, 2  ;;  %v1520_v37 = vrot.slane %v1519_v15, 2  ;;  %v1527_v3 = vrot.slane %v1526_v27, 2 }
  0xe4   :  { %v1502_v35 = vmax.f32 %v1500_v17, %v1501_v0  ;;  %v1533_v33 = vmax.f32 %v1531_v11, %v1532_v31  ;;  %v1539_v6 = vrot.slane %v1538_v25, 4  ;;  %v1434_v29 = vrot.slane %v1433_v23, 4 }
  0xe5   :  { %v1508_v59 = vrot.slane %v1507_v32, 1  ;;  %v1514_v44 = vmax.f32 %v1512_v46, %v1513_v34  ;;  %v1521_v38 = vmax.f32 %v1519_v15, %v1520_v37  ;;  %v1528_v40 = vmax.f32 %v1526_v27, %v1527_v3  ;;  %v3132_v3 = vld [vmem:[#allocation15_spill] sm:$0xff] }
  0xe6   :  { %v1534_v7 = vrot.slane %v1533_v33, 2  ;;  %v1540_v13 = vmax.f32 %v1538_v25, %v1539_v6  ;;  %v1756_v61 = vsel %vm1114_vm1, %v1502_v35, %v1495_v48  ;;  %v1435_v16 = vmax.f32 %v1433_v23, %v1434_v29 }
  0xe7   :  { %v1509_v8 = vmax.f32 %v1507_v32, %v1508_v59  ;;  %v1515_v63 = vrot.slane %v1514_v44, 1  ;;  %v1522_v47 = vrot.slane %v1521_v38, 1  ;;  %v1529_v51 = vrot.slane %v1528_v40, 1 }
  0xe8   :  { %v1535_v19 = vmax.f32 %v1533_v33, %v1534_v7  ;;  %v1541_v9 = vrot.slane %v1540_v13, 2  ;;  %v1436_v50 = vrot.slane %v1435_v16, 2  ;;  %v1440_v14 = vsel %vm601_vm0, %v3127_v42, -inf }
  0xe9   :  { %v1516_v60 = vmax.f32 %v1514_v44, %v1515_v63  ;;  %v1523_v20 = vmax.f32 %v1521_v38, %v1522_v47  ;;  %v1530_v36 = vmax.f32 %v1528_v40, %v1529_v51  ;;  %v1757_v21 = vsel %vm1116_vm2, %v1509_v8, %v1756_v61  ;;  %v3133_v40 = vld [vmem:[#allocation19_spill] sm:$0xff] }
  0xea   :  { %v1536_v53 = vrot.slane %v1535_v19, 1  ;;  %v1542_v56 = vmax.f32 %v1540_v13, %v1541_v9  ;;  %v1437_v62 = vmax.f32 %v1435_v16, %v1436_v50  ;;  %v1441_v52 = vrot.slane %v1440_v14, 4  ;;  %v3134_v13 = vld [vmem:[#allocation20_spill] sm:$0xff] }
  0xeb   :  { %v1758_v10 = vsel %vm1118_vm3, %v1516_v60, %v1757_v21  ;;  %v1447_v22 = vsel %vm601_vm0, %v3128_v55, -inf  ;;  %v1454_v4 = vsel %vm601_vm0, %v3129_v45, -inf  ;;  %v1461_v1 = vsel %vm601_vm0, %v3130_v30, -inf }
  0xec   :  { %v1537_v49 = vmax.f32 %v1535_v19, %v1536_v53  ;;  %v1543_v12 = vrot.slane %v1542_v56, 1  ;;  %v1759_v43 = vsel %vm1120_vm4, %v1523_v20, %v1758_v10  ;;  %v1438_v24 = vrot.slane %v1437_v62, 1 }
  0xed   :  { %v1760_v58 = vsel %vm1122_vm5, %v1530_v36, %v1759_v43  ;;  %v1442_v48 = vmax.f32 %v1440_v14, %v1441_v52  ;;  %v1448_v17 = vrot.slane %v1447_v22, 4  ;;  %v1455_v11 = vrot.slane %v1454_v4, 4 }
  0xee   :  { %v1544_v5 = vmax.f32 %v1542_v56, %v1543_v12  ;;  %v1761_v46 = vsel %vm1124_vm6, %v1537_v49, %v1760_v58  ;;  %v1439_v15 = vmax.f32 %v1437_v62, %v1438_v24  ;;  %v1462_v27 = vrot.slane %v1461_v1, 4  ;;  %v3135_v12 = vld [vmem:[#allocation24_spill] sm:$0xff]  ;;  %v3136_v24 = vld [vmem:[#allocation21_spill] sm:$0xff] }
  0xef   :  { %v1443_v0 = vrot.slane %v1442_v48, 2  ;;  %v1449_v31 = vmax.f32 %v1447_v22, %v1448_v17  ;;  %v1456_v25 = vmax.f32 %v1454_v4, %v1455_v11  ;;  %v1468_v23 = vsel %vm601_vm0, %v3131_v26, -inf }
  0xf0   :  { %v1762_v32 = vsel %vm1126_vm7, %v1544_v5, %v1761_v46  ;;  %v1463_v34 = vmax.f32 %v1461_v1, %v1462_v27  ;;  %v1469_v37 = vrot.slane %v1468_v23, 4  ;;  %v1475_v35 = vsel %vm601_vm0, %v3132_v3, -inf }
  0xf1   :  { %1912 = vmax.xlane.f32.xlu1 %v1762_v32  ;;  %v1444_v33 = vmax.f32 %v1442_v48, %v1443_v0  ;;  %v1450_v6 = vrot.slane %v1449_v31, 2  ;;  %v1457_v29 = vrot.slane %v1456_v25, 2  ;;  %v1476_v59 = vrot.slane %v1475_v35, 4 }
  0xf2   :  { %v1464_v44 = vrot.slane %v1463_v34, 2  ;;  %v1470_v38 = vmax.f32 %v1468_v23, %v1469_v37  ;;  %v1482_v7 = vsel %vm601_vm0, %v3133_v40, -inf  ;;  %v1545_v61 = vsel %vm601_vm0, %v3134_v13, -inf  ;;  %v3137_v23 = vld [vmem:[#allocation25_spill] sm:$0xff] }
  0xf3   :  { %v1445_v16 = vrot.slane %v1444_v33, 1  ;;  %v1451_v8 = vmax.f32 %v1449_v31, %v1450_v6  ;;  %v1458_v63 = vmax.f32 %v1456_v25, %v1457_v29  ;;  %v1477_v47 = vmax.f32 %v1475_v35, %v1476_v59  ;;  %v3138_v29 = vld [vmem:[#allocation22_spill] sm:$0xff] }
  0xf4   :  { %v1465_v51 = vmax.f32 %v1463_v34, %v1464_v44  ;;  %v1471_v19 = vrot.slane %v1470_v38, 2  ;;  %v1483_v9 = vrot.slane %v1482_v7, 4  ;;  %v1546_v50 = vrot.slane %v1545_v61, 4  ;;  %v3139_v44 = vld [vmem:[#allocation28_spill] sm:$0xff] }
  0xf5   :  { %v1446_v42 = vmax.f32 %v1444_v33, %v1445_v16  ;;  %v1452_v14 = vrot.slane %v1451_v8, 1  ;;  %v1459_v60 = vrot.slane %v1458_v63, 1  ;;  %v1478_v20 = vrot.slane %v1477_v47, 2 }
  0xf6   :  { %v1466_v36 = vrot.slane %v1465_v51, 1  ;;  %v1472_v21 = vmax.f32 %v1470_v38, %v1471_v19  ;;  %v1484_v53 = vmax.f32 %v1482_v7, %v1483_v9  ;;  %v1547_v56 = vmax.f32 %v1545_v61, %v1546_v50 }
  0xf7   :  { %v1453_v62 = vmax.f32 %v1451_v8, %v1452_v14  ;;  %v1460_v52 = vmax.f32 %v1458_v63, %v1459_v60  ;;  %v1479_v10 = vmax.f32 %v1477_v47, %v1478_v20  ;;  %v1749_v55 = vsel %vm1114_vm1, %v1446_v42, %v1439_v15  ;;  %v3140_v63 = vld [vmem:[#allocation23_spill] sm:$0xff] }
  0xf8   :  { %v1467_v22 = vmax.f32 %v1465_v51, %v1466_v36  ;;  %v1473_v45 = vrot.slane %v1472_v21, 1  ;;  %v1485_v4 = vrot.slane %v1484_v53, 2  ;;  %v1548_v30 = vrot.slane %v1547_v56, 2  ;;  %v3141_v51 = vld [vmem:[#allocation29_spill] sm:$0xff] }
  0xf9   :  { %v1480_v1 = vrot.slane %v1479_v10, 1  ;;  %v1750_v49 = vsel %vm1116_vm2, %v1453_v62, %v1749_v55  ;;  %v1552_v43 = vsel %vm601_vm0, %v3135_v12, -inf  ;;  %v1559_v58 = vsel %vm601_vm0, %v3136_v24, -inf }
  0xfa   :  { %v1474_v48 = vmax.f32 %v1472_v21, %v1473_v45  ;;  %v1486_v17 = vmax.f32 %v1484_v53, %v1485_v4  ;;  %v1751_v11 = vsel %vm1118_vm3, %v1460_v52, %v1750_v49  ;;  %v1549_v5 = vmax.f32 %v1547_v56, %v1548_v30  ;;  %v3142_v21 = vld [vmem:[#allocation26_spill] sm:$0xff] }
  0xfb   :  { %v1481_v46 = vmax.f32 %v1479_v10, %v1480_v1  ;;  %v1752_v15 = vsel %vm1120_vm4, %v1467_v22, %v1751_v11  ;;  %v1553_v27 = vrot.slane %v1552_v43, 4  ;;  %v1560_v0 = vrot.slane %v1559_v58, 4 }
  0xfc   :  { %v1487_v31 = vrot.slane %v1486_v17, 1  ;;  %v1753_v25 = vsel %vm1122_vm5, %v1474_v48, %v1752_v15  ;;  %v1550_v26 = vrot.slane %v1549_v5, 1  ;;  %v1566_v32 = vsel %vm601_vm0, %v3137_v23, -inf }
  0xfd   :  { %v1754_v34 = vsel %vm1124_vm6, %v1481_v46, %v1753_v25  ;;  %v1554_v37 = vmax.f32 %v1552_v43, %v1553_v27  ;;  %v1561_v3 = vmax.f32 %v1559_v58, %v1560_v0  ;;  %v1567_v35 = vrot.slane %v1566_v32, 4  ;;  %v3143_v46 = vld [vmem:[#allocation31_spill] sm:$0xff] }
  0xfe   :  { %v1488_v33 = vmax.f32 %v1486_v17, %v1487_v31  ;;  %v1551_v6 = vmax.f32 %v1549_v5, %v1550_v26  ;;  %v1573_v59 = vsel %vm601_vm0, %v3138_v29, -inf  ;;  %v1580_v38 = vsel %vm601_vm0, %v3139_v44, -inf }
  0xff   :  { %v1555_v40 = vrot.slane %v1554_v37, 2  ;;  %v1562_v7 = vrot.slane %v1561_v3, 2  ;;  %v1568_v13 = vmax.f32 %v1566_v32, %v1567_v35  ;;  %v1574_v61 = vrot.slane %v1573_v59, 4 }
 0x100   :  { %v1755_v16 = vsel %vm1126_vm7, %v1488_v33, %v1754_v34  ;;  %v1581_v8 = vrot.slane %v1580_v38, 4  ;;  %v1587_v47 = vsel %vm601_vm0, %v3140_v63, -inf  ;;  %v1594_v19 = vsel %vm601_vm0, %v3141_v51, -inf  ;;  %v3144_v33 = vld [vmem:[#allocation27_spill] sm:$0xff] }
 0x101   :  { %1910 = vmax.xlane.f32.xlu0 %v1755_v16  ;;  %v1556_v9 = vmax.f32 %v1554_v37, %v1555_v40  ;;  %v1563_v50 = vmax.f32 %v1561_v3, %v1562_v7  ;;  %v1569_v42 = vrot.slane %v1568_v13, 2  ;;  %v1575_v14 = vmax.f32 %v1573_v59, %v1574_v61  ;;  %v3145_v61 = vld [vmem:[#allocation33_spill] sm:$0xff] }
 0x102   :  { %v1582_v60 = vmax.f32 %v1580_v38, %v1581_v8  ;;  %v1588_v20 = vrot.slane %v1587_v47, 4  ;;  %v1595_v36 = vrot.slane %v1594_v19, 4  ;;  %v1321_v53 = vsel %vm601_vm0, %v3142_v21, -inf }
 0x103   :  { %v1557_v56 = vrot.slane %v1556_v9, 1  ;;  %v1564_v62 = vrot.slane %v1563_v50, 1  ;;  %v1570_v52 = vmax.f32 %v1568_v13, %v1569_v42  ;;  %v1576_v10 = vrot.slane %v1575_v14, 2  ;;  %v3147_v42 = vld [vmem:[#allocation34_spill] sm:$0xff] }
 0x104   :  { %v1583_v55 = vrot.slane %v1582_v60, 2  ;;  %v1589_v22 = vmax.f32 %v1587_v47, %v1588_v20  ;;  %v1596_v45 = vmax.f32 %v1594_v19, %v1595_v36  ;;  %v1322_v4 = vrot.slane %v1321_v53, 4 }
 0x105   :  { %v1558_v30 = vmax.f32 %v1556_v9, %v1557_v56  ;;  %v1565_v1 = vmax.f32 %v1563_v50, %v1564_v62  ;;  %v1571_v49 = vrot.slane %v1570_v52, 1  ;;  %v1577_v12 = vmax.f32 %v1575_v14, %v1576_v10  ;;  %v3146_v9 = vld [vmem:[#allocation30_spill] sm:$0xff] }
 0x106   :  { %v1584_v43 = vmax.f32 %v1582_v60, %v1583_v55  ;;  %v1590_v24 = vrot.slane %v1589_v22, 2  ;;  %v1597_v58 = vrot.slane %v1596_v45, 2  ;;  %v1323_v48 = vmax.f32 %v1321_v53, %v1322_v4  ;;  %v3148_v60 = vld [vmem:[#allocation32_spill] sm:$0xff]  ;;  %v3149_v4 = vld [vmem:[#allocation35_spill] sm:$0xff] }
 0x107   :  { %v1572_v17 = vmax.f32 %v1570_v52, %v1571_v49  ;;  %v1578_v11 = vrot.slane %v1577_v12, 1  ;;  %v1763_v5 = vsel %vm1114_vm1, %v1558_v30, %v1551_v6  ;;  %v1328_v15 = vsel %vm601_vm0, %v3143_v46, -inf }
 0x108   :  { %v1585_v27 = vrot.slane %v1584_v43, 1  ;;  %v1591_v0 = vmax.f32 %v1589_v22, %v1590_v24  ;;  %v1598_v31 = vmax.f32 %v1596_v45, %v1597_v58  ;;  %v1764_v25 = vsel %vm1116_vm2, %v1565_v1, %v1763_v5  ;;  %v3150_v1 = vld [vmem:[#allocation36_spill] sm:$0xff] }
 0x109   :  { %v1579_v26 = vmax.f32 %v1577_v12, %v1578_v11  ;;  %v1765_v23 = vsel %vm1118_vm3, %v1572_v17, %v1764_v25  ;;  %v1324_v32 = vrot.slane %v1323_v48, 2  ;;  %v1329_v34 = vrot.slane %v1328_v15, 4 }
 0x10a   :  { %v1586_v37 = vmax.f32 %v1584_v43, %v1585_v27  ;;  %v1592_v3 = vrot.slane %v1591_v0, 1  ;;  %v1599_v35 = vrot.slane %v1598_v31, 1  ;;  %v1335_v29 = vsel %vm601_vm0, %v3144_v33, -inf }
 0x10b   :  { %v1766_v6 = vsel %vm1120_vm4, %v1579_v26, %v1765_v23  ;;  %v1325_v59 = vmax.f32 %v1323_v48, %v1324_v32  ;;  %v1330_v44 = vmax.f32 %v1328_v15, %v1329_v34  ;;  %v1336_v38 = vrot.slane %v1335_v29, 4 }
 0x10c   :  { %v1593_v40 = vmax.f32 %v1591_v0, %v1592_v3  ;;  %v1600_v7 = vmax.f32 %v1598_v31, %v1599_v35  ;;  %v1767_v13 = vsel %vm1122_vm5, %v1586_v37, %v1766_v6  ;;  %v1342_v16 = vsel %vm601_vm0, %v3145_v61, -inf  ;;  %v3151_v6 = vld [vmem:[#allocation40_spill] sm:$0xff] }
 0x10d   :  { %v1326_v8 = vrot.slane %v1325_v59, 1  ;;  %v1331_v63 = vrot.slane %v1330_v44, 2  ;;  %v1337_v47 = vmax.f32 %v1335_v29, %v1336_v38  ;;  %v1343_v51 = vrot.slane %v1342_v16, 4 }
 0x10e   :  { %v1768_v19 = vsel %vm1124_vm6, %v1593_v40, %v1767_v13  ;;  %v1349_v50 = vsel %vm601_vm0, %v3146_v9, -inf  ;;  %v1356_v14 = vsel %vm601_vm0, %v3147_v42, -inf  ;;  %v1363_v20 = vsel %vm601_vm0, %v3148_v60, -inf }
 0x10f   :  { %v1769_v36 = vsel %vm1126_vm7, %v1600_v7, %v1768_v19  ;;  %v1327_v21 = vmax.f32 %v1325_v59, %v1326_v8  ;;  %v1332_v53 = vmax.f32 %v1330_v44, %v1331_v63  ;;  %v1338_v56 = vrot.slane %v1337_v47, 2  ;;  %v3152_v8 = vld [vmem:[#allocation37_spill] sm:$0xff] }
 0x110   :  { %1914 = vmax.xlane.f32.xlu1 %v1769_v36  ;;  %v1344_v62 = vmax.f32 %v1342_v16, %v1343_v51  ;;  %v1350_v52 = vrot.slane %v1349_v50, 4  ;;  %v1357_v10 = vrot.slane %v1356_v14, 4  ;;  %v1364_v55 = vrot.slane %v1363_v20, 4  ;;  %v3153_v36 = vld [vmem:[#allocation41_spill] sm:$0xff] }
 0x111   :  { %v1333_v22 = vrot.slane %v1332_v53, 1  ;;  %v1339_v45 = vmax.f32 %v1337_v47, %v1338_v56  ;;  %v1370_v30 = vsel %vm601_vm0, %v3149_v4, -inf  ;;  %v1601_v49 = vsel %vm601_vm0, %v3150_v1, -inf }
 0x112   :  { %v1345_v12 = vrot.slane %v1344_v62, 2  ;;  %v1351_v43 = vmax.f32 %v1349_v50, %v1350_v52  ;;  %v1358_v24 = vmax.f32 %v1356_v14, %v1357_v10  ;;  %v1365_v58 = vmax.f32 %v1363_v20, %v1364_v55 }
 0x113   :  { %v1334_v48 = vmax.f32 %v1332_v53, %v1333_v22  ;;  %v1340_v17 = vrot.slane %v1339_v45, 1  ;;  %v1371_v11 = vrot.slane %v1370_v30, 4  ;;  %v1602_v5 = vrot.slane %v1601_v49, 4  ;;  %v3154_v53 = vld [vmem:[#allocation38_spill] sm:$0xff] }
 0x114   :  { %v1346_v46 = vmax.f32 %v1344_v62, %v1345_v12  ;;  %v1352_v15 = vrot.slane %v1351_v43, 2  ;;  %v1359_v27 = vrot.slane %v1358_v24, 2  ;;  %v1366_v0 = vrot.slane %v1365_v58, 2  ;;  %v3155_v62 = vld [vmem:[#allocation42_spill] sm:$0xff] }
 0x115   :  { %v1341_v31 = vmax.f32 %v1339_v45, %v1340_v17  ;;  %v1372_v25 = vmax.f32 %v1370_v30, %v1371_v11  ;;  %v1735_v26 = vsel %vm1114_vm1, %v1334_v48, %v1327_v21  ;;  %v1603_v23 = vmax.f32 %v1601_v49, %v1602_v5 }
 0x116   :  { %v1347_v32 = vrot.slane %v1346_v46, 1  ;;  %v1353_v34 = vmax.f32 %v1351_v43, %v1352_v15  ;;  %v1360_v37 = vmax.f32 %v1358_v24, %v1359_v27  ;;  %v1367_v3 = vmax.f32 %v1365_v58, %v1366_v0  ;;  %v3156_v58 = vld [vmem:[#allocation39_spill] sm:$0xff] }
 0x117   :  { %v1373_v35 = vrot.slane %v1372_v25, 2  ;;  %v1736_v33 = vsel %vm1116_vm2, %v1341_v31, %v1735_v26  ;;  %v1604_v29 = vrot.slane %v1603_v23, 2  ;;  %v1608_v59 = vsel %vm601_vm0, %v3151_v6, -inf  ;;  %v3157_v0 = vld [vmem:[#allocation43_spill] sm:$0xff] }
 0x118   :  { %v1348_v44 = vmax.f32 %v1346_v46, %v1347_v32  ;;  %v1354_v38 = vrot.slane %v1353_v34, 1  ;;  %v1361_v40 = vrot.slane %v1360_v37, 1  ;;  %v1368_v7 = vrot.slane %v1367_v3, 1 }
 0x119   :  { %v1374_v13 = vmax.f32 %v1372_v25, %v1373_v35  ;;  %v1605_v61 = vmax.f32 %v1603_v23, %v1604_v29  ;;  %v1609_v16 = vrot.slane %v1608_v59, 4  ;;  %v1615_v63 = vsel %vm601_vm0, %v3152_v8, -inf }
 0x11a   :  { %v1355_v47 = vmax.f32 %v1353_v34, %v1354_v38  ;;  %v1362_v51 = vmax.f32 %v1360_v37, %v1361_v40  ;;  %v1369_v19 = vmax.f32 %v1367_v3, %v1368_v7  ;;  %v1737_v9 = vsel %vm1118_vm3, %v1348_v44, %v1736_v33 }
 0x11b   :  { %v1375_v50 = vrot.slane %v1374_v13, 1  ;;  %v1606_v42 = vrot.slane %v1605_v61, 1  ;;  %v1610_v14 = vmax.f32 %v1608_v59, %v1609_v16  ;;  %v1616_v60 = vrot.slane %v1615_v63, 4 }
 0x11c   :  { %v1738_v20 = vsel %vm1120_vm4, %v1355_v47, %v1737_v9  ;;  %v1622_v21 = vsel %vm601_vm0, %v3153_v36, -inf  ;;  %v1629_v56 = vsel %vm601_vm0, %v3154_v53, -inf  ;;  %v1636_v52 = vsel %vm601_vm0, %v3155_v62, -inf }
 0x11d   :  { %v1376_v10 = vmax.f32 %v1374_v13, %v1375_v50  ;;  %v1739_v55 = vsel %vm1122_vm5, %v1362_v51, %v1738_v20  ;;  %v1607_v22 = vmax.f32 %v1605_v61, %v1606_v42  ;;  %v1611_v45 = vrot.slane %v1610_v14, 2 }
 0x11e   :  { %v1740_v4 = vsel %vm1124_vm6, %v1369_v19, %v1739_v55  ;;  %v1617_v30 = vmax.f32 %v1615_v63, %v1616_v60  ;;  %v1623_v1 = vrot.slane %v1622_v21, 4  ;;  %v1630_v49 = vrot.slane %v1629_v56, 4 }
 0x11f   :  { %v1741_v12 = vsel %vm1126_vm7, %v1376_v10, %v1740_v4  ;;  %v1612_v43 = vmax.f32 %v1610_v14, %v1611_v45  ;;  %v1637_v24 = vrot.slane %v1636_v52, 4  ;;  %v1643_v48 = vsel %vm601_vm0, %v3156_v58, -inf }
 0x120   :  { %1906 = vmax.xlane.f32.xlu0 %v1741_v12  ;;  %v1618_v17 = vrot.slane %v1617_v30, 2  ;;  %v1624_v11 = vmax.f32 %v1622_v21, %v1623_v1  ;;  %v1631_v5 = vmax.f32 %v1629_v56, %v1630_v49  ;;  %v1644_v46 = vrot.slane %v1643_v48, 4 }
 0x121   :  { %v1613_v15 = vrot.slane %v1612_v43, 1  ;;  %v1638_v27 = vmax.f32 %v1636_v52, %v1637_v24  ;;  %v1650_v31 = vsel %vm601_vm0, %v3157_v0, -inf  ;;  %v1377_v25 = vsel %vm601_vm0, %v2707_v57, -inf }
 0x122   :  { %v1619_v26 = vmax.f32 %v1617_v30, %v1618_v17  ;;  %v1625_v23 = vrot.slane %v1624_v11, 2  ;;  %v1632_v32 = vrot.slane %v1631_v5, 2  ;;  %v1645_v34 = vmax.f32 %v1643_v48, %v1644_v46 }
 0x123   :  { %v1614_v37 = vmax.f32 %v1612_v43, %v1613_v15  ;;  %v1639_v3 = vrot.slane %v1638_v27, 2  ;;  %v1651_v35 = vrot.slane %v1650_v31, 4  ;;  %v1378_v33 = vrot.slane %v1377_v25, 4 }
 0x124   :  { %v1620_v29 = vrot.slane %v1619_v26, 1  ;;  %v1626_v6 = vmax.f32 %v1624_v11, %v1625_v23  ;;  %v1633_v59 = vmax.f32 %v1631_v5, %v1632_v32  ;;  %v1646_v44 = vrot.slane %v1645_v34, 2 }
 0x125   :  { %v1640_v38 = vmax.f32 %v1638_v27, %v1639_v3  ;;  %v1652_v40 = vmax.f32 %v1650_v31, %v1651_v35  ;;  %v1770_v7 = vsel %vm1114_vm1, %v1614_v37, %v1607_v22  ;;  %v1379_v13 = vmax.f32 %v1377_v25, %v1378_v33 }
 0x126   :  { %v1621_v61 = vmax.f32 %v1619_v26, %v1620_v29  ;;  %v1627_v16 = vrot.slane %v1626_v6, 1  ;;  %v1634_v57 = vrot.slane %v1633_v59, 1  ;;  %v1647_v8 = vmax.f32 %v1645_v34, %v1646_v44  ;;  %v3158_v26 = vld [vmem:[#allocation44_spill] sm:$0xff]  ;;  %v1821_v29 = vpop.xlane.xlu1 %1820 }
 0x127   :  { %v1641_v63 = vrot.slane %v1640_v38, 1  ;;  %v1653_v47 = vrot.slane %v1652_v40, 2  ;;  %v1380_v51 = vrot.slane %v1379_v13, 2  ;;  %v1384_v19 = vsel %vm601_vm0, %v2745_v41, -inf }
 0x128   :  { %v1628_v9 = vmax.f32 %v1626_v6, %v1627_v16  ;;  %v1635_v50 = vmax.f32 %v1633_v59, %v1634_v57  ;;  %v1648_v42 = vrot.slane %v1647_v8, 1  ;;  %v1771_v14 = vsel %vm1116_vm2, %v1621_v61, %v1770_v7 }
 0x129   :  { %v1642_v60 = vmax.f32 %v1640_v38, %v1641_v63  ;;  %v1654_v20 = vmax.f32 %v1652_v40, %v1653_v47  ;;  %v1381_v36 = vmax.f32 %v1379_v13, %v1380_v51  ;;  %v1385_v21 = vrot.slane %v1384_v19, 4 }
 0x12a   :  { %v1649_v53 = vmax.f32 %v1647_v8, %v1648_v42  ;;  %v1772_v56 = vsel %vm1118_vm3, %v1628_v9, %v1771_v14  ;;  %v1391_v62 = vsel %vm601_vm0, %v2710_v54, -inf  ;;  %v1398_v52 = vsel %vm601_vm0, %v2749_v18, -inf  ;;  %v1823_v14 = vpop.xlane.xlu1 %1822 }
 0x12b   :  { %v1655_v10 = vrot.slane %v1654_v20, 1  ;;  %v1773_v41 = vsel %vm1120_vm4, %v1635_v50, %v1772_v56  ;;  %v1386_v55 = vmax.f32 %v1384_v19, %v1385_v21  ;;  %v1392_v45 = vrot.slane %v1391_v62, 4 }
 0x12c   :  { %v1774_v22 = vsel %vm1122_vm5, %v1642_v60, %v1773_v41  ;;  %v1399_v4 = vrot.slane %v1398_v52, 4  ;;  %v1405_v30 = vsel %vm601_vm0, %v2733_v28, -inf  ;;  %v1382_v12 = vrot.slane %v1381_v36, 1 }
 0x12d   :  { %v1656_v1 = vmax.f32 %v1654_v20, %v1655_v10  ;;  %v1775_v49 = vsel %vm1124_vm6, %v1649_v53, %v1774_v22  ;;  %v1387_v43 = vrot.slane %v1386_v55, 2  ;;  %v1393_v54 = vmax.f32 %v1391_v62, %v1392_v45 }
 0x12e   :  { %v1400_v24 = vmax.f32 %v1398_v52, %v1399_v4  ;;  %v1406_v58 = vrot.slane %v1405_v30, 4  ;;  %v1412_v18 = vsel %vm601_vm0, %v2754_v39, -inf  ;;  %v1419_v5 = vsel %vm601_vm0, %v2740_v2, -inf  ;;  %v1825_v10 = vpop.xlane.xlu1 %1824 }
 0x12f   :  { %v1776_v48 = vsel %vm1126_vm7, %v1656_v1, %v1775_v49  ;;  %v1388_v17 = vmax.f32 %v1386_v55, %v1387_v43  ;;  %v1413_v11 = vrot.slane %v1412_v18, 4  ;;  %v1394_v28 = vrot.slane %v1393_v54, 2  ;;  %v3160_v49 = vld [vmem:[#allocation11_spill] sm:$0xff] }
 0x130   :  { %1916 = vmax.xlane.f32.xlu1 %v1776_v48  ;;  %v1401_v46 = vrot.slane %v1400_v24, 2  ;;  %v1407_v15 = vmax.f32 %v1405_v30, %v1406_v58  ;;  %v1420_v27 = vrot.slane %v1419_v5, 4  ;;  %v1383_v0 = vmax.f32 %v1381_v36, %v1382_v12  ;;  %v1813_v36 = vpop.xlane.xlu0 %1812 }
 0x131   :  { %v1389_v31 = vrot.slane %v1388_v17, 1  ;;  %v1414_v25 = vmax.f32 %v1412_v18, %v1413_v11  ;;  %v1426_v23 = vsel %vm601_vm0, %v3158_v26, -inf  ;;  %v1395_v32 = vmax.f32 %v1393_v54, %v1394_v28 }
 0x132   :  { %v1402_v39 = vmax.f32 %v1400_v24, %v1401_v46  ;;  %v1408_v34 = vrot.slane %v1407_v15, 2  ;;  %v1421_v37 = vmax.f32 %v1419_v5, %v1420_v27  ;;  %v1427_v33 = vrot.slane %v1426_v23, 4 }
 0x133   :  { %v1390_v3 = vmax.f32 %v1388_v17, %v1389_v31  ;;  %v1415_v35 = vrot.slane %v1414_v25, 2  ;;  %v1396_v2 = vrot.slane %v1395_v32, 1  ;;  %v3159_v41 = vlaneseq }
 0x134   :  { %v1403_v6 = vrot.slane %v1402_v39, 1  ;;  %v1409_v59 = vmax.f32 %v1407_v15, %v1408_v34  ;;  %v1422_v44 = vrot.slane %v1421_v37, 2  ;;  %v1428_v40 = vmax.f32 %v1426_v23, %v1427_v33  ;;  %v1815_v22 = vpop.xlane.xlu0 %1814 }
 0x135   :  { %v1416_v38 = vmax.f32 %v1414_v25, %v1415_v35  ;;  %v1742_v7 = vsel %vm1114_vm1, %v1390_v3, %v1383_v0  ;;  %v1397_v13 = vmax.f32 %v1395_v32, %v1396_v2  ;;  %v1845_v55 = vand.u32 127, %v3159_v41  ;;  %v1969_v2 = vld [vmem:[%s3048_s1 + $0x8] sm:$0xff] }
 0x136   :  { %v1404_v61 = vmax.f32 %v1402_v39, %v1403_v6  ;;  %v1410_v16 = vrot.slane %v1409_v59, 1  ;;  %v1423_v57 = vmax.f32 %v1421_v37, %v1422_v44  ;;  %v1429_v63 = vrot.slane %v1428_v40, 2 }
 0x137   :  { %v1417_v8 = vrot.slane %v1416_v38, 1  ;;  %v1743_v19 = vsel %vm1116_vm2, %v1397_v13, %v1742_v7  ;;  %v1850_v45 = vadd.s32 4294967288, %v1845_v55  ;;  %v1857_v4 = vadd.s32 4294967280, %v1845_v55  ;;  %v1971_v7 = vld [vmem:[%s3048_s1 + $0x18] sm:$0xff] }
 0x138   :  { %v1411_v47 = vmax.f32 %v1409_v59, %v1410_v16  ;;  %v1424_v51 = vrot.slane %v1423_v57, 1  ;;  %v1430_v50 = vmax.f32 %v1428_v40, %v1429_v63  ;;  %v1744_v42 = vsel %vm1118_vm3, %v1404_v61, %v1743_v19  ;;  %v1817_v54 = vpop.xlane.xlu0 %1816  ;;  %v1970_v40 = vld [vmem:[%s3048_s1 + $0x10] sm:$0xff] }
 0x139   :  { %v1418_v9 = vmax.f32 %v1416_v38, %v1417_v8  ;;  %v1864_v30 = vadd.s32 4294967272, %v1845_v55  ;;  %v2973_v12 = vsub.s32 %v1850_v45, %v3160_v49  ;;  %v1833_v43 = vmul.f32 0.00390625, %v1823_v14 }
 0x13a   :  { %v1425_v60 = vmax.f32 %v1423_v57, %v1424_v51  ;;  %v1745_v20 = vsel %vm1120_vm4, %v1411_v47, %v1744_v42  ;;  %v1431_v21 = vrot.slane %v1430_v50, 1  ;;  %v2976_v24 = vsub.s32 %v1845_v55, %v3160_v49 }
 0x13b   :  { %v1746_v53 = vsel %vm1122_vm5, %v1418_v9, %v1745_v20  ;;  %v2979_v58 = vsub.s32 %v1857_v4, %v3160_v49  ;;  %v1834_v18 = vmul.f32 0.00390625, %v1825_v10  ;;  %v1832_v48 = vmul.f32 0.00390625, %v1821_v29  ;;  %v1968_v29 = vld [vmem:[%s3048_s1] sm:$0xff] }
 0x13c   :  { %v1747_v56 = vsel %vm1124_vm6, %v1425_v60, %v1746_v53  ;;  %v1432_v62 = vmax.f32 %v1430_v50, %v1431_v21  ;;  %v1827_v1 = vpop.xlane.xlu1 %1826  ;;  %v1829_v17 = vmul.f32 0.00390625, %v1815_v22  ;;  %v2982_v11 = vsub.s32 %v1864_v30, %v3160_v49  ;;  %v2047_v30 = vld [vmem:[%s3049_s2] sm:$0x3]  ;;  %s2219_s2 = scalar_lea.vmem %s2143_s8, 32 }
 0x13d   :  { %v1835_v5 = vmul.f32 0.00390625, %v1827_v1  ;;  %v1830_v28 = vmul.f32 0.00390625, %v1817_v54  ;;  %v1828_v46 = vmul.f32 0.00390625, %v1813_v36  ;;  %v1878_v15 = vrot.slane %v1833_v43, %v2973_v12  ;;  %2174 = vmatpush3.msk.msra.mxu1 %vm601_vm0, %v2047_v30  ;;  %p2220_p8 = scmp.ne.s32.totalorder %s2143_s8, %s2219_s2  ;;  %p2225_p10 = scmp.lt.s32.totalorder %s2219_s2, %s2219_s2 }
 0x13e   :  { %v1748_v52 = vsel %vm1126_vm7, %v1432_v62, %v1747_v56  ;;  %v1883_v27 = vrot.slane %v1834_v18, %v2979_v58  ;;  %v1874_v0 = vrot.slane %v1832_v48, %v2976_v24  ;;  %v1854_v31 = vrot.slane %v1829_v17, %v2973_v12 }
 0x13f   :  { %1908 = vmax.xlane.f32.xlu0 %v1748_v52  ;;  %v1888_v25 = vrot.slane %v1835_v5, %v2982_v11  ;;  %v1861_v26 = vrot.slane %v1830_v28, %v2979_v58  ;;  %v1849_v32 = vrot.slane %v1828_v46, %v2976_v24  ;;  %v2179_v59 = vpack.c.bf16 %v1969_v2, %v1968_v29  ;;  %p2226_p11 = por %p2225_p10, %p2224_p9 }
 0x140   :  { %v1879_v39 = vsel %vm1855_vm8, %v1878_v15, %v1874_v0  ;;  %v2251_v38 = vmov 0.0|0.0   ;;  %v2182_v61 = vpack.c.bf16 %v1971_v7, %v1970_v40  ;;  %v3161_v16 = vmov 0.0  }
 0x141   :  { %v1884_v37 = vsel %vm1862_vm9, %v1883_v27, %v1879_v39  ;;  %v1856_v3 = vsel %vm1855_vm8, %v1854_v31, %v1849_v32  ;;  %2178 = vmatprep.subr.bf16.mxu0 %v2251_v38  ;;  %2170 = vmatprep.mubr.msk.f32.mxu0 %vm2252_vm12, %v3161_v16  ;;  %p2227_p12 = pnand %p2226_p11, %p2220_p8 }
 0x142   :  { %v1889_v35 = vsel %vm1869_vm10, %v1888_v25, %v1884_v37  ;;  %v1863_v6 = vsel %vm1862_vm9, %v1861_v26, %v1856_v3  ;;  %2180 = vmatpush3.bf16.msra.mxu0 %v2179_v59  ;;  %2175 = vmatprep.mubr.msk.f32.mxu1 %vm2252_vm12, %v3161_v16 }
 0x143   :  { %2181 = vmatprep.subr.bf16.mxu0 %v2251_v38 }
 0x146   :  { %2183 = vmatpush3.bf16.msra.mxu0 %v2182_v61 }
 0x14d   :  { %v1819_v23 = vpop.xlane.xlu0 %1818 }
 0x14e   :  { %v1831_v34 = vmul.f32 0.00390625, %v1819_v23 }
 0x150   :  { %v1868_v33 = vrot.slane %v1831_v34, %v2982_v11 }
 0x152   :  { %v1870_v44 = vsel %vm1869_vm10, %v1868_v33, %v1863_v6 }
 0x153   :  { %v1890_v13 = vsel %vm1114_vm1, %v1889_v35, %v1870_v44 }
 0x154   :  { %1893 = vst.msk [vmem:[#allocation4] sm:$0x3] %vm1892_vm11, %v1890_v13 }
 0x15e   :  { %v1905_v57 = vpop.xlane.xlu1 %1904 }
 0x15f   :  { %v1933_v60 = vrot.slane %v1905_v57, %v2973_v12 }
 0x16e   :  { %v1903_v8 = vpop.xlane.xlu0 %1902 }
 0x16f   :  { %v1929_v20 = vrot.slane %v1903_v8, %v2976_v24 }
 0x171   :  { %v1934_v52 = vsel %vm1855_vm8, %v1933_v60, %v1929_v20 }
 0x17e   :  { %v1913_v63 = vpop.xlane.xlu1 %1912 }
 0x17f   :  { %v1952_v50 = vrot.slane %v1913_v63, %v2973_v12 }
 0x18e   :  { %v1911_v47 = vpop.xlane.xlu0 %1910 }
 0x18f   :  { %v1948_v42 = vrot.slane %v1911_v47, %v2976_v24 }
 0x191   :  { %v1953_v53 = vsel %vm1855_vm8, %v1952_v50, %v1948_v42 }
 0x19d   :  { %v1915_v51 = vpop.xlane.xlu1 %1914 }
 0x19e   :  { %v1957_v14 = vrot.slane %v1915_v51, %v2979_v58 }
 0x1a0   :  { %v1958_v56 = vsel %vm1862_vm9, %v1957_v14, %v1953_v53 }
 0x1ad   :  { %v1907_v19 = vpop.xlane.xlu0 %1906 }
 0x1ae   :  { %v1938_v21 = vrot.slane %v1907_v19, %v2979_v58 }
 0x1b0   :  { %v1939_v55 = vsel %vm1862_vm9, %v1938_v21, %v1934_v52 }
 0x1bd   :  { %v1917_v9 = vpop.xlane.xlu1 %1916 }
 0x1be   :  { %v1962_v36 = vrot.slane %v1917_v9, %v2982_v11 }
 0x1c0   :  { %v1963_v10 = vsel %vm1869_vm10, %v1962_v36, %v1958_v56 }
 0x1cc   :  { %v1909_v62 = vpop.xlane.xlu0 %1908 }
 0x1cd   :  { %v1943_v41 = vrot.slane %v1909_v62, %v2982_v11 }
 0x1cf   :  { %v1944_v22 = vsel %vm1869_vm10, %v1943_v41, %v1939_v55 }
 0x1d0   :  { %v1964_v45 = vsel %vm1114_vm1, %v1963_v10, %v1944_v22 }
 0x1d1   :  { %1966 = vst.msk [vmem:[#allocation4 + $0x2] sm:$0x3] %vm1892_vm11, %v1964_v45 }
 0x1d8   :  { %v1967_v4 = vld [vmem:[#allocation4] sm:$0xf] }
 0x1d9   :  { %2171 = vmatmul.mubr.msk.f32.vlgmr.msra.gmra.mrb[0].mxu0 %vm1972_vm13, %v1967_v4 }
 0x2ac   :  { %v2042_v1 = vpop.f32.mrb[0].mxu0 }
 0x2ad   :  { %v2046_v49 = vmax.f32 %v2042_v1, 0.0  ;;  %v2172_v12 = vpop.f32.mrb[1].mxu0 }
 0x2af   :  { %2176 = vmatmul.mubr.msk.f32.vlgmr.msra.gmra.mrb[0].mxu1 %vm2048_vm14, %v2046_v49 }
 0x382   :  { %v2121_v43 = vpop.f32.mrb[0].mxu1 }
 0x383   :  { %v2126_v54 = vrot.slane %v2121_v43, 2  ;;  %v2177_v24 = vpop.f32.mrb[1].mxu1 }
 0x385   :  { %v2128_v58 = vadd.f32 %v2126_v54, %v2121_v43 }
 0x387   :  { %v2154_v18 = vmul.f32 -1.442695, %v2128_v58 }
 0x389   :  { %2193 = vpow2.f32 %v2154_v18 }
 0x393   :  { %v2194_v48 = vpop.eup %2193 }
 0x394   :  { %v2132_v17 = vadd.f32 1.0, %v2194_v48 }
 0x396   :  { %2195 = vrcp.f32 %v2132_v17 }
 0x3a0   :  { %v2196_v11 = vpop.eup %2195 }
 0x3a1   :  { %2135 = vst.msk [vmem:[#allocation8] sm:$0x3] %vm1892_vm11, %v2196_v11 }
 0x3a2   :  { %2230 = shalt.err (!%p2227_p12)
}
 0x3a3   :  { %s2231_s11 = scalar_lea.hbm %s3050_s3, 32 }
 0x3a4   :  { %p2232_p13 = scmp.ne.s32.totalorder %s3050_s3, %s2231_s11  ;;  %p2235_p0 = scmp.lt.u32.totalorder %s2231_s11, %s3050_s3 }
 0x3a6   :  { %p2237_p1 = pnand %p2235_p0, %p2232_p13 }
 0x3a8   :  { %2240 = shalt.err (!%p2237_p1)
}
 0x3a9   :  { %2145 = dma.vmem_to_hbm [thread:$0]  %s2143_s8, 32, %s3050_s3, [#allocation7]  }
 0x3aa   :  { %2243 = dma.done.wait [#allocation7], 32  }
 0x3ab   :  { %2244 = vsyncadd [#allocation7], 4294967264 }
 0x3ac   :  { %2149 = vsyncpa [#allocation6], 1 }
 0x3ad   :  { %2150 = vsyncpa [#allocation7], 1 }

</bundles_post_ra>
